<compile_context>
chip_gen: v6e
topology: v6e:2x2x1
jax: 0.10.0
libtpu: 0.0.40
codegen_flags: <defaults>
</compile_context>

<pallas_src>
import jax
import jax.numpy as jnp
from jax.experimental import pallas as pl
from jax.experimental.pallas import tpu as pltpu

FEA_DIM = 512
NEG_SLOPE = 0.01      # nn.LeakyReLU default slope
OUT_PAD = 128         # lane-dense padded width of the 3-way head
EMB_DIM = 64


def _leaky_relu(v):
    return jnp.where(v >= 0, v, NEG_SLOPE * v)


def _round_up(a, m):
    return ((a + m - 1) // m) * m


def _choose_k_tiling(in_feat, max_tile_k):
    """Pick (tile_k, k_pad) so tile_k is a multiple of 128, divides k_pad, and
    avoids padding xf whenever in_feat is already a lane multiple."""
    if in_feat <= max_tile_k:
        k_pad = _round_up(in_feat, 128)
        return k_pad, k_pad
    if in_feat % 128 == 0:
        for cand in range(max_tile_k, 255, -128):
            if in_feat % cand == 0:
                return cand, in_feat
    tile_k = max_tile_k
    return tile_k, _round_up(in_feat, tile_k)


# ---------------------------------------------------------------------------
# Fused kernel: K-tiled backbone-surrogate matmul + precomputed gate + head
# ---------------------------------------------------------------------------
def _axial_fused_kernel(xf_ref, gate_ref, wb_ref,
                        bb_ref, w4_ref, b4_ref, w5_ref, b5_ref,
                        out_ref, acc_ref):
    kk = pl.program_id(1)

    # ---- backbone surrogate: (tile_n, tk) x (tk, 512), f32 accumulation ----
    @pl.when(kk == 0)
    def _():
        acc_ref[...] = jnp.zeros_like(acc_ref)

    acc_ref[...] += jnp.dot(xf_ref[...].astype(jnp.bfloat16), wb_ref[...],
                            preferred_element_type=jnp.float32)

    # ---- epilogue only on the last K step (output tile resident across K) ----
    @pl.when(kk == pl.num_programs(1) - 1)
    def _():
        feat = acc_ref[...] + bb_ref[...]

        # x = x * sigmoid-gate (gate precomputed in f32 from the 5-row
        # embedding table); Dropout(0.1) is identity at inference time.
        y = feat * gate_ref[...]

        # out_linear: Linear(512,512) -> LeakyReLU -> Linear(512,3)
        # (final weight zero-padded to 128 lanes for an unmasked store)
        y = _leaky_relu(jnp.dot(y.astype(jnp.bfloat16), w4_ref[...],
                                preferred_element_type=jnp.float32) + b4_ref[...])
        out_ref[...] = jnp.dot(y.astype(jnp.bfloat16), w5_ref[...],
                               preferred_element_type=jnp.float32) + b5_ref[...]


# ---------------------------------------------------------------------------
# Parameter construction (deterministic, PyTorch-style uniform init)
# ---------------------------------------------------------------------------
def init_params(key, in_feat):
    def linear(k, fan_in, fan_out):
        kw, kb = jax.random.split(k)
        bound = 1.0 / (fan_in ** 0.5)
        w = jax.random.uniform(kw, (fan_in, fan_out), jnp.float32, -bound, bound)
        b = jax.random.uniform(kb, (1, fan_out), jnp.float32, -bound, bound)
        return w, b

    keys = jax.random.split(key, 8)
    params = {}
    # nn.Embedding(5, 64) — N(0, 1) init
    params["emb"] = jax.random.normal(keys[0], (5, EMB_DIM), jnp.float32)
    # backbone surrogate: flattened pixels -> 512
    params["wb"], params["bb"] = linear(keys[1], in_feat, FEA_DIM)
    # cond_fea_extractor
    params["w1"], params["b1"] = linear(keys[2], EMB_DIM, 128)
    params["w2"], params["b2"] = linear(keys[3], 128, 256)
    params["w3"], params["b3"] = linear(keys[4], 256, FEA_DIM)
    # out_linear
    params["w4"], params["b4"] = linear(keys[5], FEA_DIM, FEA_DIM)
    params["w5"], params["b5"] = linear(keys[6], FEA_DIM, 3)
    return params


# ---------------------------------------------------------------------------
# Wrapper: glue reshapes / gate precompute / padding + pallas_call
# ---------------------------------------------------------------------------
def axial_model_25d_forward(x, cond, params, *, tile_n=256, max_tile_k=1024):
    b, k, d, h, w = x.shape
    n = b * k
    in_feat = d * h * w

    # --- glue: fold (b,k), flatten spatial (pure reshape, no copy/cast) ---
    xf = x.reshape(n, in_feat)

    # --- cond gate hoisted out of the kernel: the sigmoid MLP depends only on
    #     the 5-row embedding table, so compute a (5, 512) f32 gate table once
    #     in plain JAX and gather it per row.  Exact f32 numerics, negligible
    #     cost, and it removes three small matmuls from the kernel epilogue.
    lrelu = lambda v: jnp.where(v >= 0, v, NEG_SLOPE * v)
    t = lrelu(params["emb"] @ params["w1"] + params["b1"])
    t = lrelu(t @ params["w2"] + params["b2"])
    gate_table = jax.nn.sigmoid(t @ params["w3"] + params["b3"])     # (5, 512)
    gate = jnp.take(gate_table, cond.reshape(-1), axis=0)            # (n, 512)

    # --- row tiling: clamp the 256-row default to the padded row count so
    #     tiny batches get a single exact tile with no padding pass ---
    n8 = _round_up(n, 8)
    if n8 <= tile_n:
        tile_n_eff, n_pad = n8, n8
    else:
        tile_n_eff, n_pad = tile_n, _round_up(n, tile_n)

    # --- K tiling: prefer a tile_k that divides in_feat (no xf padding) ---
    tile_k, k_pad = _choose_k_tiling(in_feat, max_tile_k)

    pad_rows, pad_cols = n_pad - n, k_pad - in_feat
    if pad_rows or pad_cols:
        xf = jnp.pad(xf, ((0, pad_rows), (0, pad_cols)))
    if pad_rows:
        gate = jnp.pad(gate, ((0, pad_rows), (0, 0)))

    # --- weights: bf16 matmul operands (accumulation stays f32 in-kernel) ---
    wb = params["wb"]
    if pad_cols:
        wb = jnp.pad(wb, ((0, pad_cols), (0, 0)))
    wb = wb.astype(jnp.bfloat16)
    w4 = params["w4"].astype(jnp.bfloat16)
    # lane-dense head: zero-pad (512,3)->(512,128) and (1,3)->(1,128)
    w5 = jnp.pad(params["w5"], ((0, 0), (0, OUT_PAD - 3))).astype(jnp.bfloat16)
    b5 = jnp.pad(params["b5"], ((0, 0), (0, OUT_PAD - 3)))
    bb, b4 = params["bb"], params["b4"]

    grid = (n_pad // tile_n_eff, k_pad // tile_k)
    row_tiles = grid[0]

    in_specs = [
        pl.BlockSpec((tile_n_eff, tile_k), lambda i, kk: (i, kk)),    # xf (row/K tiled)
        pl.BlockSpec((tile_n_eff, FEA_DIM), lambda i, kk: (i, 0)),    # precomputed gate
        pl.BlockSpec((tile_k, FEA_DIM), lambda i, kk: (kk, 0)),       # wb (K tiled)
        pl.BlockSpec((1, FEA_DIM), lambda i, kk: (0, 0)),             # bb
        pl.BlockSpec((FEA_DIM, FEA_DIM), lambda i, kk: (0, 0)),       # w4
        pl.BlockSpec((1, FEA_DIM), lambda i, kk: (0, 0)),             # b4
        pl.BlockSpec((FEA_DIM, OUT_PAD), lambda i, kk: (0, 0)),       # w5
        pl.BlockSpec((1, OUT_PAD), lambda i, kk: (0, 0)),             # b5
    ]
    out_specs = pl.BlockSpec((tile_n_eff, OUT_PAD), lambda i, kk: (i, 0))

    # Advisory cost estimate (wb is re-streamed once per row tile).
    flops = 2 * n_pad * (k_pad * FEA_DIM + FEA_DIM * FEA_DIM + FEA_DIM * OUT_PAD)
    const_bytes = sum(int(a.size) * a.dtype.itemsize for a in (bb, w4, b4, w5, b5))
    bytes_accessed = (int(xf.size) * xf.dtype.itemsize
                      + int(gate.size) * 4
                      + row_tiles * int(wb.size) * 2
                      + const_bytes
                      + n_pad * OUT_PAD * 4)
    cost = pl.CostEstimate(flops=int(flops), transcendentals=0,
                           bytes_accessed=int(bytes_accessed))

    out = pl.pallas_call(
        _axial_fused_kernel,
        out_shape=jax.ShapeDtypeStruct((n_pad, OUT_PAD), jnp.float32),
        grid=grid,
        in_specs=in_specs,
        out_specs=out_specs,
        scratch_shapes=[pltpu.VMEM((tile_n_eff, FEA_DIM), jnp.float32)],
        compiler_params=pltpu.CompilerParams(
            dimension_semantics=("parallel", "arbitrary"),
            vmem_limit_bytes=32 * 1024 * 1024),
        cost_estimate=cost,
    )(xf, gate, wb, bb, w4, b4, w5, b5)

    # Un-pad, then x.reshape(b, k, 3).reshape(b, -1)
    return out[:n, :3].reshape(b, k * 3)


# ---------------------------------------------------------------------------
# Pure-JAX (f32) reference for sanity checking
# ---------------------------------------------------------------------------
def reference_forward(x, cond, params):
    b, k, d, h, w = x.shape
    n = b * k
    xf = x.reshape(n, d * h * w).astype(jnp.float32)
    ce = jnp.take(params["emb"], cond.reshape(-1), axis=0)
    lrelu = lambda v: jnp.where(v >= 0, v, NEG_SLOPE * v)
    feat = xf @ params["wb"] + params["bb"]
    c = lrelu(ce @ params["w1"] + params["b1"])
    c = lrelu(c @ params["w2"] + params["b2"])
    c = jax.nn.sigmoid(c @ params["w3"] + params["b3"])
    y = feat * c
    y = lrelu(y @ params["w4"] + params["b4"])
    y = y @ params["w5"] + params["b5"]
    return y.reshape(b, k * 3)


if __name__ == "__main__":
    key = jax.random.PRNGKey(0)
    kx, kc, kp = jax.random.split(key, 3)

    # Small shapes consistent with the module: b=2, k=4 slices, in_chans=3, 16x16.
    b, k, d, h, w = 2, 4, 3, 16, 16
    x = jax.random.normal(kx, (b, k, d, h, w), jnp.float32)
    cond = jax.random.randint(kc, (b, k), 0, 5, jnp.int32)

    params = init_params(kp, d * h * w)

    out = axial_model_25d_forward(x, cond, params)
    out = jax.block_until_ready(out)

    ref = reference_forward(x, cond, params)
    assert out.shape == (b, k * 3), out.shape
    # bf16 matmul operands with f32 accumulation: loosen tolerance vs f32 ref.
    assert jnp.allclose(out, ref, atol=3e-2, rtol=3e-2), (
        "mismatch vs reference", float(jnp.max(jnp.abs(out - ref))))

    print("KERNEL_OK")
</pallas_src>

<mosaic_0001>
module attributes {stable_mosaic.version = 11 : i64} {
  func.func @_axial_fused_kernel(%arg0: i32, %arg1: i32, %arg2: memref<8x768xf32, #tpu.memory_space<vmem>>, %arg3: memref<8x512xf32, #tpu.memory_space<vmem>>, %arg4: memref<768x512xbf16, #tpu.memory_space<vmem>>, %arg5: memref<1x512xf32, #tpu.memory_space<vmem>>, %arg6: memref<512x512xbf16, #tpu.memory_space<vmem>>, %arg7: memref<1x512xf32, #tpu.memory_space<vmem>>, %arg8: memref<512x128xbf16, #tpu.memory_space<vmem>>, %arg9: memref<1x128xf32, #tpu.memory_space<vmem>>, %arg10: memref<8x128xf32, #tpu.memory_space<vmem>>, %arg11: memref<8x512xf32, #tpu.memory_space<vmem>>) attributes {dimension_semantics = [#tpu.dimension_semantics<parallel>, #tpu.dimension_semantics<arbitrary>], iteration_bounds = array<i64: 1, 1>, scalar_prefetch = 0 : i64, scratch_operands = 1 : i64, tpu.core_type = #tpu.core_type<tc>, window_params = [{transform_indices = @transform_0, window_bounds = array<i64: 8, 768>}, {transform_indices = @transform_1, window_bounds = array<i64: 8, 512>}, {transform_indices = @transform_2, window_bounds = array<i64: 768, 512>}, {pipeline_mode = #tpu.pipeline_mode<synchronous>, transform_indices = @transform_3, window_bounds = array<i64: 1, 512>}, {pipeline_mode = #tpu.pipeline_mode<synchronous>, transform_indices = @transform_4, window_bounds = array<i64: 512, 512>}, {pipeline_mode = #tpu.pipeline_mode<synchronous>, transform_indices = @transform_5, window_bounds = array<i64: 1, 512>}, {pipeline_mode = #tpu.pipeline_mode<synchronous>, transform_indices = @transform_6, window_bounds = array<i64: 512, 128>}, {pipeline_mode = #tpu.pipeline_mode<synchronous>, transform_indices = @transform_7, window_bounds = array<i64: 1, 128>}, {transform_indices = @transform_8, window_bounds = array<i64: 8, 128>}]} {
    %c0_i32 = arith.constant 0 : i32
    %0 = arith.cmpi eq, %arg1, %c0_i32 : i32
    %1 = arith.extui %0 : i1 to i32
    %c0_i32_0 = arith.constant 0 : i32
    %2 = arith.cmpi ne, %1, %c0_i32_0 : i32
    scf.if %2 {
      %cst_10 = arith.constant 0.000000e+00 : f32
      %13 = vector.broadcast %cst_10 : f32 to vector<8x512xf32>
      %c0_11 = arith.constant 0 : index
      %c0_12 = arith.constant 0 : index
      %14 = vector.load %arg11[%c0_11, %c0_12] : memref<8x512xf32, #tpu.memory_space<vmem>>, vector<8x512xf32>
      tpu.vector_store %arg11[%c0_11, %c0_12], %13 {strides = array<i32>} : memref<8x512xf32, #tpu.memory_space<vmem>>, vector<8x512xf32>,
    } else {
    }
    %c0 = arith.constant 0 : index
    %c0_1 = arith.constant 0 : index
    %3 = vector.load %arg11[%c0, %c0_1] : memref<8x512xf32, #tpu.memory_space<vmem>>, vector<8x512xf32>
    %c0_2 = arith.constant 0 : index
    %c0_3 = arith.constant 0 : index
    %4 = vector.load %arg2[%c0_2, %c0_3] : memref<8x768xf32, #tpu.memory_space<vmem>>, vector<8x768xf32>
    %5 = arith.truncf %4 : vector<8x768xf32> to vector<8x768xbf16>
    %c0_4 = arith.constant 0 : index
    %c0_5 = arith.constant 0 : index
    %6 = vector.load %arg4[%c0_4, %c0_5] : memref<768x512xbf16, #tpu.memory_space<vmem>>, vector<768x512xbf16>
    %cst = arith.constant dense<0.000000e+00> : vector<8x512xf32>
    %7 = tpu.matmul %5, %6, %cst {dimension_numbers = #tpu.dot_dimension_numbers<[1], [0], [0], [1], [0, 0, 1, 1], [], []>} : vector<8x768xbf16>, vector<768x512xbf16>, vector<8x512xf32> -> vector<8x512xf32>
    %8 = arith.addf %3, %7 : vector<8x512xf32>
    %c0_6 = arith.constant 0 : index
    %c0_7 = arith.constant 0 : index
    %9 = vector.load %arg11[%c0_6, %c0_7] : memref<8x512xf32, #tpu.memory_space<vmem>>, vector<8x512xf32>
    tpu.vector_store %arg11[%c0_6, %c0_7], %8 {strides = array<i32>} : memref<8x512xf32, #tpu.memory_space<vmem>>, vector<8x512xf32>,
    %c0_i32_8 = arith.constant 0 : i32
    %10 = arith.cmpi eq, %arg1, %c0_i32_8 : i32
    %11 = arith.extui %10 : i1 to i32
    %c0_i32_9 = arith.constant 0 : i32
    %12 = arith.cmpi ne, %11, %c0_i32_9 : i32
    scf.if %12 {
      %c0_10 = arith.constant 0 : index
      %c0_11 = arith.constant 0 : index
      %13 = vector.load %arg11[%c0_10, %c0_11] : memref<8x512xf32, #tpu.memory_space<vmem>>, vector<8x512xf32>
      %c0_12 = arith.constant 0 : index
      %c0_13 = arith.constant 0 : index
      %14 = vector.load %arg5[%c0_12, %c0_13] : memref<1x512xf32, #tpu.memory_space<vmem>>, vector<1x512xf32>
      %15 = vector.broadcast %14 : vector<1x512xf32> to vector<8x512xf32>
      %16 = arith.addf %13, %15 : vector<8x512xf32>
      %c0_14 = arith.constant 0 : index
      %c0_15 = arith.constant 0 : index
      %17 = vector.load %arg3[%c0_14, %c0_15] : memref<8x512xf32, #tpu.memory_space<vmem>>, vector<8x512xf32>
      %18 = arith.mulf %16, %17 : vector<8x512xf32>
      %19 = arith.truncf %18 : vector<8x512xf32> to vector<8x512xbf16>
      %c0_16 = arith.constant 0 : index
      %c0_17 = arith.constant 0 : index
      %20 = vector.load %arg6[%c0_16, %c0_17] : memref<512x512xbf16, #tpu.memory_space<vmem>>, vector<512x512xbf16>
      %cst_18 = arith.constant dense<0.000000e+00> : vector<8x512xf32>
      %21 = tpu.matmul %19, %20, %cst_18 {dimension_numbers = #tpu.dot_dimension_numbers<[1], [0], [0], [1], [0, 0, 1, 1], [], []>} : vector<8x512xbf16>, vector<512x512xbf16>, vector<8x512xf32> -> vector<8x512xf32>
      %c0_19 = arith.constant 0 : index
      %c0_20 = arith.constant 0 : index
      %22 = vector.load %arg7[%c0_19, %c0_20] : memref<1x512xf32, #tpu.memory_space<vmem>>, vector<1x512xf32>
      %23 = vector.broadcast %22 : vector<1x512xf32> to vector<8x512xf32>
      %24 = arith.addf %21, %23 : vector<8x512xf32>
      %cst_21 = arith.constant 0.000000e+00 : f32
      %25 = vector.broadcast %cst_21 : f32 to vector<8x512xf32>
      %26 = arith.cmpf oge, %24, %25 : vector<8x512xf32>
      %cst_22 = arith.constant 0.00999999977 : f32
      %27 = vector.broadcast %cst_22 : f32 to vector<8x512xf32>
      %28 = arith.mulf %27, %24 : vector<8x512xf32>
      %29 = arith.select %26, %24, %28 : vector<8x512xi1>, vector<8x512xf32>
      %30 = arith.truncf %29 : vector<8x512xf32> to vector<8x512xbf16>
      %c0_23 = arith.constant 0 : index
      %c0_24 = arith.constant 0 : index
      %31 = vector.load %arg8[%c0_23, %c0_24] : memref<512x128xbf16, #tpu.memory_space<vmem>>, vector<512x128xbf16>
      %cst_25 = arith.constant dense<0.000000e+00> : vector<8x128xf32>
      %32 = tpu.matmul %30, %31, %cst_25 {dimension_numbers = #tpu.dot_dimension_numbers<[1], [0], [0], [1], [0, 0, 1, 1], [], []>} : vector<8x512xbf16>, vector<512x128xbf16>, vector<8x128xf32> -> vector<8x128xf32>
      %c0_26 = arith.constant 0 : index
      %c0_27 = arith.constant 0 : index
      %33 = vector.load %arg9[%c0_26, %c0_27] : memref<1x128xf32, #tpu.memory_space<vmem>>, vector<1x128xf32>
      %34 = vector.broadcast %33 : vector<1x128xf32> to vector<8x128xf32>
      %35 = arith.addf %32, %34 : vector<8x128xf32>
      %c0_28 = arith.constant 0 : index
      %c0_29 = arith.constant 0 : index
      %36 = vector.load %arg10[%c0_28, %c0_29] : memref<8x128xf32, #tpu.memory_space<vmem>>, vector<8x128xf32>
      tpu.vector_store %arg10[%c0_28, %c0_29], %35 {strides = array<i32>} : memref<8x128xf32, #tpu.memory_space<vmem>>, vector<8x128xf32>,
    } else {
    }
    return
  }
  func.func @transform_0(%arg0: i32, %arg1: i32) -> (i32, i32) {
    %c0_i32 = arith.constant 0 : i32
    return %arg0, %arg1 : i32, i32
  }
  func.func @transform_1(%arg0: i32, %arg1: i32) -> (i32, i32) {
    %c0_i32 = arith.constant 0 : i32
    %c0_i32_0 = arith.constant 0 : i32
    return %arg0, %c0_i32 : i32, i32
  }
  func.func @transform_2(%arg0: i32, %arg1: i32) -> (i32, i32) {
    %c0_i32 = arith.constant 0 : i32
    %c0_i32_0 = arith.constant 0 : i32
    return %arg1, %c0_i32 : i32, i32
  }
  func.func @transform_3(%arg0: i32, %arg1: i32) -> (i32, i32) {
    %c0_i32 = arith.constant 0 : i32
    %c0_i32_0 = arith.constant 0 : i32
    %c0_i32_1 = arith.constant 0 : i32
    return %c0_i32, %c0_i32_0 : i32, i32
  }
  func.func @transform_4(%arg0: i32, %arg1: i32) -> (i32, i32) {
    %c0_i32 = arith.constant 0 : i32
    %c0_i32_0 = arith.constant 0 : i32
    %c0_i32_1 = arith.constant 0 : i32
    return %c0_i32, %c0_i32_0 : i32, i32
  }
  func.func @transform_5(%arg0: i32, %arg1: i32) -> (i32, i32) {
    %c0_i32 = arith.constant 0 : i32
    %c0_i32_0 = arith.constant 0 : i32
    %c0_i32_1 = arith.constant 0 : i32
    return %c0_i32, %c0_i32_0 : i32, i32
  }
  func.func @transform_6(%arg0: i32, %arg1: i32) -> (i32, i32) {
    %c0_i32 = arith.constant 0 : i32
    %c0_i32_0 = arith.constant 0 : i32
    %c0_i32_1 = arith.constant 0 : i32
    return %c0_i32, %c0_i32_0 : i32, i32
  }
  func.func @transform_7(%arg0: i32, %arg1: i32) -> (i32, i32) {
    %c0_i32 = arith.constant 0 : i32
    %c0_i32_0 = arith.constant 0 : i32
    %c0_i32_1 = arith.constant 0 : i32
    return %c0_i32, %c0_i32_0 : i32, i32
  }
  func.func @transform_8(%arg0: i32, %arg1: i32) -> (i32, i32) {
    %c0_i32 = arith.constant 0 : i32
    %c0_i32_0 = arith.constant 0 : i32
    return %arg0, %c0_i32 : i32, i32
  }
}

</mosaic_0001>

<bundles_post_ra>
// kernel: tpu_custom_call.1
= control target key start
LH: loop header
LB: loop body
LE: loop exit
PB: predicated region body
PF: predicated region fallthrough
CT: control target
= control target key end

     0   :  { %13 = vsyncpa [#allocation4], 0  ;;  %s4096_s0 = inlined_call_operand.hbm [shape: f32[8,768], index: 0, kind: input, shape index: {}]   ;;  %s4097_s1 = inlined_call_operand.hbm [shape: f32[8,512], index: 1, kind: input, shape index: {}]   ;;  %s4098_s2 = inlined_call_operand.hbm [shape: bf16[768,512], index: 2, kind: input, shape index: {}]   ;;  %s4099_s3 = inlined_call_operand.vmem [shape: f32[1,512], index: 3, kind: input, shape index: {}]   ;;  %s4100_s4 = inlined_call_operand.hbm [shape: bf16[512,512], index: 4, kind: input, shape index: {}]   ;;  %s4101_s5 = inlined_call_operand.vmem [shape: f32[1,512], index: 5, kind: input, shape index: {}]   ;;  %s4102_s6 = inlined_call_operand.hbm [shape: bf16[512,128], index: 6, kind: input, shape index: {}]   ;;  %s4103_s7 = inlined_call_operand.vmem [shape: f32[1,128], index: 7, kind: input, shape index: {}]   ;;  %s4104_s8 = inlined_call_operand.hbm [shape: f32[8,128], index: 8, kind: output, shape index: {}]  }
   0x1   :  { %14 = vsyncpa [#allocation7], 0 }
   0x2   :  { %15 = vsyncpa [#allocation10], 0 }
   0x3   :  { %16 = vsyncpa [#allocation5], 0  ;;  %s3948_s27 = smov [#allocation6]  }
   0x4   :  { %s33_s28 = sshll.u32 %s3948_s27, 4  ;;  %s34_s28 = int_to_ptr.vmem [resolvable:$true] %s33_s28 }
   0x5   :  { %s3828_s29 = scalar_lea.vmem %s34_s28, 512  ;;  %p3833_p1 = scmp.lt.s32.totalorder %s34_s28, %s34_s28 }
   0x6   :  { %p3829_p0 = scmp.ne.s32.totalorder %s34_s28, %s3828_s29  ;;  %p3834_p2 = scmp.lt.s32.totalorder %s3828_s29, %s3828_s29 }
   0x8   :  { %p3835_p3 = por %p3834_p2, %p3833_p1 }
   0xa   :  { %p3836_p4 = pnand %p3835_p3, %p3829_p0 }
   0xc   :  { %3839 = shalt.err (!%p3836_p4)
}
   0xd   :  { %36 = dma.hbm_to_vmem [thread:$0]  %s4097_s1, 512, %s34_s28, [#allocation7]  }
   0xe   :  { %s3949_s10 = smov [#allocation9]   ;;  %s3950_s12 = smov [#allocation3]  }
   0xf   :  { %s56_s11 = sshll.u32 %s3949_s10, 4  ;;  %s23_s13 = sshll.u32 %s3950_s12, 4  ;;  %s57_s11 = int_to_ptr.vmem [resolvable:$true] %s56_s11  ;;  %s24_s13 = int_to_ptr.vmem [resolvable:$true] %s23_s13 }
  0x10   :  { %s3848_s14 = scalar_lea.vmem %s57_s11, 16384  ;;  %p3853_p6 = scmp.lt.s32.totalorder %s57_s11, %s57_s11 }
  0x11   :  { %p3849_p5 = scmp.ne.s32.totalorder %s57_s11, %s3848_s14  ;;  %p3854_p7 = scmp.lt.s32.totalorder %s3848_s14, %s3848_s14 }
  0x13   :  { %p3855_p8 = por %p3854_p7, %p3853_p6 }
  0x15   :  { %p3856_p9 = pnand %p3855_p8, %p3849_p5 }
  0x17   :  { %3859 = shalt.err (!%p3856_p9)
}
  0x18   :  { %s3951_s15 = smov 256   ;;  %s3952_s16 = smov 16  }
  0x19   :  { %62 = dma.hbm_to_vmem [thread:$0]  %s4100_s4, 16384, %s57_s11, [#allocation10], %s3951_s15, %s3951_s15, %s3952_s16  }
  0x1a   :  { %s3868_s1 = scalar_lea.vmem %s24_s13, 768  ;;  %p3873_p11 = scmp.lt.s32.totalorder %s24_s13, %s24_s13 }
  0x1b   :  { %p3869_p10 = scmp.ne.s32.totalorder %s24_s13, %s3868_s1  ;;  %p3874_p12 = scmp.lt.s32.totalorder %s3868_s1, %s3868_s1 }
  0x1d   :  { %p3875_p13 = por %p3874_p12, %p3873_p11 }
  0x1f   :  { %p3876_p0 = pnand %p3875_p13, %p3869_p10 }
  0x21   :  { %3879 = shalt.err (!%p3876_p0)
}
  0x22   :  { %26 = dma.hbm_to_vmem [thread:$0]  %s4096_s0, 768, %s24_s13, [#allocation4]  }
  0x23   :  { %s3953_s21 = smov [#allocation8]   ;;  %s3954_s23 = smov [#allocation11]  }
  0x24   :  { %s42_s22 = sshll.u32 %s3953_s21, 4  ;;  %s70_s24 = sshll.u32 %s3954_s23, 4  ;;  %s43_s22 = int_to_ptr.vmem [resolvable:$true] %s42_s22  ;;  %s71_s24 = int_to_ptr.vmem [resolvable:$true] %s70_s24 }
  0x25   :  { %s3888_s25 = scalar_lea.vmem %s43_s22, 24576  ;;  %p3893_p2 = scmp.lt.s32.totalorder %s43_s22, %s43_s22 }
  0x26   :  { %p3889_p1 = scmp.ne.s32.totalorder %s43_s22, %s3888_s25  ;;  %p3894_p3 = scmp.lt.s32.totalorder %s3888_s25, %s3888_s25 }
  0x28   :  { %p3895_p4 = por %p3894_p3, %p3893_p2 }
  0x2a   :  { %p3896_p5 = pnand %p3895_p4, %p3889_p1 }
  0x2c   :  { %3899 = shalt.err (!%p3896_p5)
}
  0x2d   :  { %48 = dma.hbm_to_vmem [thread:$0]  %s4098_s2, 24576, %s43_s22, [#allocation7], %s3951_s15, %s3951_s15, %s3952_s16  }
  0x2e   :  { %s3908_s27 = scalar_lea.vmem %s71_s24, 4096  ;;  %p3913_p7 = scmp.lt.s32.totalorder %s71_s24, %s71_s24 }
  0x2f   :  { %p3909_p6 = scmp.ne.s32.totalorder %s71_s24, %s3908_s27  ;;  %p3914_p8 = scmp.lt.s32.totalorder %s3908_s27, %s3908_s27 }
  0x31   :  { %p3915_p9 = por %p3914_p8, %p3913_p7 }
  0x33   :  { %p3916_p10 = pnand %p3915_p9, %p3909_p6 }
  0x35   :  { %3919 = shalt.err (!%p3916_p10)
}
  0x36   :  { %s3955_s0 = smov 64   ;;  %s3956_s28 = smov 4  }
  0x37   :  { %76 = dma.hbm_to_vmem [thread:$0]  %s4102_s6, 4096, %s71_s24, [#allocation10], %s3955_s0, %s3955_s0, %s3956_s28  }
  0x38   :  { %3940 = dma.done.wait [#allocation4], 768  }
  0x39   :  { %3941 = vsyncadd [#allocation4], 4294966528 }
  0x3a   :  { %3942 = dma.done.wait [#allocation7], 25088  }
  0x3b   :  { %3943 = vsyncadd [#allocation7], 4294942208 }
  0x3c   :  { %3944 = dma.done.wait [#allocation10], 20480  }
  0x3d   :  { %3945 = vsyncadd [#allocation10], 4294946816  ;;  %v3308_v0 = vld [vmem:[#allocation8 + $0xe4] ss:$16 sps:$4 sm:$0xff]   ;;  %v3312_v2 = vld [vmem:[#allocation8 + $0xe0] ss:$16 sps:$4 sm:$0xff]  }
  0x3e   :  { %v3310_v1 = vld [vmem:[#allocation8 + $0x2e4] ss:$16 sps:$4 sm:$0xff]   ;;  %1271 = vmatprep.subr.bf16.mxu0 %v3308_v0  ;;  %v3313_v3 = vld [vmem:[#allocation8 + $0x2e0] ss:$16 sps:$4 sm:$0xff]   ;;  %v108_v46 = vld [vmem:[#allocation3 + $0x8] sm:$0xff]  ;;  %s3957_s11 = smov [#allocation12]  }
  0x3f   :  { %1312 = vmatprep.subr.bf16.mxu1 %v3310_v1  ;;  %v3314_v4 = vld [vmem:[#allocation8 + $0xc4] ss:$16 sps:$4 sm:$0xff]   ;;  %1272 = vmatpush1.bf16.msra.mxu0 %v3312_v2  ;;  %v3318_v6 = vld [vmem:[#allocation8 + $0xc0] ss:$16 sps:$4 sm:$0xff]   ;;  %v4018_v49 = vpack.c.bf16 %v108_v46, %v108_v46  ;;  %v110_v50 = vld [vmem:[#allocation3 + $0x18] sm:$0xff]  ;;  %s2890_s12 = sshll.u32 %s3957_s11, 4  ;;  %s2891_s12 = int_to_ptr.vmem [resolvable:$true] %s2890_s12 }
  0x40   :  { %1313 = vmatpush1.bf16.msra.mxu1 %v3313_v3  ;;  %v3316_v5 = vld [vmem:[#allocation8 + $0x2c4] ss:$16 sps:$4 sm:$0xff]   ;;  %1273 = vmatprep.subr.bf16.mxu0 %v3314_v4  ;;  %v3319_v7 = vld [vmem:[#allocation8 + $0x2c0] ss:$16 sps:$4 sm:$0xff]   ;;  %v4020_v52 = vpack.c.bf16 %v110_v50, %v110_v50  ;;  %s3920_s13 = scalar_lea.vmem %s2891_s12, 128  ;;  %p3925_p12 = scmp.lt.s32.totalorder %s2891_s12, %s2891_s12 }
  0x41   :  { %1314 = vmatprep.subr.bf16.mxu1 %v3316_v5  ;;  %v3320_v8 = vld [vmem:[#allocation8 + $0xa4] ss:$16 sps:$4 sm:$0xff]   ;;  %v3324_v10 = vld [vmem:[#allocation8 + $0xa0] ss:$16 sps:$4 sm:$0xff]   ;;  %1303 = vmatprep.mubr.bf16.mxu0 %v4018_v49  ;;  %p3921_p11 = scmp.ne.s32.totalorder %s2891_s12, %s3920_s13  ;;  %p3926_p13 = scmp.lt.s32.totalorder %s3920_s13, %s3920_s13 }
  0x42   :  { %v3322_v9 = vld [vmem:[#allocation8 + $0x2a4] ss:$16 sps:$4 sm:$0xff]   ;;  %v3325_v11 = vld [vmem:[#allocation8 + $0x2a0] ss:$16 sps:$4 sm:$0xff]   ;;  %1344 = vmatprep.mubr.bf16.mxu1 %v4020_v52 }
  0x43   :  { %1274 = vmatpush1.bf16.msra.mxu0 %v3318_v6  ;;  %v3326_v12 = vld [vmem:[#allocation8 + $0x84] ss:$16 sps:$4 sm:$0xff]   ;;  %v3330_v14 = vld [vmem:[#allocation8 + $0x80] ss:$16 sps:$4 sm:$0xff]   ;;  %p3927_p0 = por %p3926_p13, %p3925_p12 }
  0x44   :  { %1315 = vmatpush1.bf16.msra.mxu1 %v3319_v7  ;;  %1275 = vmatprep.subr.bf16.mxu0 %v3320_v8  ;;  %v3328_v13 = vld [vmem:[#allocation8 + $0x284] ss:$16 sps:$4 sm:$0xff]   ;;  %v3331_v15 = vld [vmem:[#allocation8 + $0x280] ss:$16 sps:$4 sm:$0xff]   ;;  %v3409_v7 = vld [vmem:[#allocation8 + $0xec] ss:$16 sps:$4 sm:$0xff]  }
  0x45   :  { %1316 = vmatprep.subr.bf16.mxu1 %v3322_v9  ;;  %v3332_v16 = vld [vmem:[#allocation8 + $0x64] ss:$16 sps:$4 sm:$0xff]   ;;  %v3336_v18 = vld [vmem:[#allocation8 + $0x60] ss:$16 sps:$4 sm:$0xff]   ;;  %p3928_p1 = pnand %p3927_p0, %p3921_p11 }
  0x46   :  { %v3334_v17 = vld [vmem:[#allocation8 + $0x264] ss:$16 sps:$4 sm:$0xff]   ;;  %v3337_v19 = vld [vmem:[#allocation8 + $0x260] ss:$16 sps:$4 sm:$0xff]  }
  0x47   :  { %1276 = vmatpush1.bf16.msra.mxu0 %v3324_v10  ;;  %v3338_v20 = vld [vmem:[#allocation8 + $0x44] ss:$16 sps:$4 sm:$0xff]   ;;  %v3342_v22 = vld [vmem:[#allocation8 + $0x40] ss:$16 sps:$4 sm:$0xff]  }
  0x48   :  { %1317 = vmatpush1.bf16.msra.mxu1 %v3325_v11  ;;  %1277 = vmatprep.subr.bf16.mxu0 %v3326_v12  ;;  %v3340_v21 = vld [vmem:[#allocation8 + $0x244] ss:$16 sps:$4 sm:$0xff]   ;;  %v3343_v23 = vld [vmem:[#allocation8 + $0x240] ss:$16 sps:$4 sm:$0xff]   ;;  %v3407_v11 = vld [vmem:[#allocation8 + $0xe8] ss:$16 sps:$4 sm:$0xff]  }
  0x49   :  { %1318 = vmatprep.subr.bf16.mxu1 %v3328_v13  ;;  %v3344_v24 = vld [vmem:[#allocation8 + $0x24] ss:$16 sps:$4 sm:$0xff]   ;;  %v3348_v26 = vld [vmem:[#allocation8 + $0x20] ss:$16 sps:$4 sm:$0xff]   ;;  %v3415_v13 = vld [vmem:[#allocation8 + $0xcc] ss:$16 sps:$4 sm:$0xff]  }
  0x4a   :  { %v3346_v25 = vld [vmem:[#allocation8 + $0x224] ss:$16 sps:$4 sm:$0xff]   ;;  %v3349_v27 = vld [vmem:[#allocation8 + $0x220] ss:$16 sps:$4 sm:$0xff]  }
  0x4b   :  { %1278 = vmatpush1.bf16.msra.mxu0 %v3330_v14  ;;  %v3350_v28 = vld [vmem:[#allocation8 + $0x4] ss:$16 sps:$4 sm:$0xff]   ;;  %v3354_v30 = vld [vmem:[#allocation8] ss:$16 sps:$4 sm:$0xff]  }
  0x4c   :  { %1319 = vmatpush1.bf16.msra.mxu1 %v3331_v15  ;;  %1279 = vmatprep.subr.bf16.mxu0 %v3332_v16  ;;  %v3352_v29 = vld [vmem:[#allocation8 + $0x204] ss:$16 sps:$4 sm:$0xff]   ;;  %v3355_v31 = vld [vmem:[#allocation8 + $0x200] ss:$16 sps:$4 sm:$0xff]   ;;  %v3413_v15 = vld [vmem:[#allocation8 + $0xc8] ss:$16 sps:$4 sm:$0xff]  }
  0x4d   :  { %1320 = vmatprep.subr.bf16.mxu1 %v3334_v17  ;;  %v3356_v32 = vld [vmem:[#allocation8 + $0x1e4] ss:$16 sps:$4 sm:$0xff]   ;;  %v3360_v34 = vld [vmem:[#allocation8 + $0x1e0] ss:$16 sps:$4 sm:$0xff]   ;;  %v3421_v17 = vld [vmem:[#allocation8 + $0xac] ss:$16 sps:$4 sm:$0xff]  }
  0x4e   :  { %v3358_v33 = vld [vmem:[#allocation8 + $0x3e4] ss:$16 sps:$4 sm:$0xff]   ;;  %v3361_v35 = vld [vmem:[#allocation8 + $0x3e0] ss:$16 sps:$4 sm:$0xff]  }
  0x4f   :  { %1280 = vmatpush1.bf16.msra.mxu0 %v3336_v18  ;;  %v3362_v36 = vld [vmem:[#allocation8 + $0x1c4] ss:$16 sps:$4 sm:$0xff]   ;;  %v3366_v38 = vld [vmem:[#allocation8 + $0x1c0] ss:$16 sps:$4 sm:$0xff]  }
  0x50   :  { %1321 = vmatpush1.bf16.msra.mxu1 %v3337_v19  ;;  %1281 = vmatprep.subr.bf16.mxu0 %v3338_v20  ;;  %v3364_v37 = vld [vmem:[#allocation8 + $0x3c4] ss:$16 sps:$4 sm:$0xff]   ;;  %v3367_v39 = vld [vmem:[#allocation8 + $0x3c0] ss:$16 sps:$4 sm:$0xff]   ;;  %v3419_v19 = vld [vmem:[#allocation8 + $0xa8] ss:$16 sps:$4 sm:$0xff]  }
  0x51   :  { %1322 = vmatprep.subr.bf16.mxu1 %v3340_v21  ;;  %v3368_v40 = vld [vmem:[#allocation8 + $0x1a4] ss:$16 sps:$4 sm:$0xff]   ;;  %v3372_v42 = vld [vmem:[#allocation8 + $0x1a0] ss:$16 sps:$4 sm:$0xff]   ;;  %v3427_v21 = vld [vmem:[#allocation8 + $0x8c] ss:$16 sps:$4 sm:$0xff]  }
  0x52   :  { %v3370_v41 = vld [vmem:[#allocation8 + $0x3a4] ss:$16 sps:$4 sm:$0xff]   ;;  %v3373_v43 = vld [vmem:[#allocation8 + $0x3a0] ss:$16 sps:$4 sm:$0xff]  }
  0x53   :  { %1282 = vmatpush1.bf16.msra.mxu0 %v3342_v22  ;;  %v3374_v44 = vld [vmem:[#allocation8 + $0x184] ss:$16 sps:$4 sm:$0xff]   ;;  %v3378_v47 = vld [vmem:[#allocation8 + $0x180] ss:$16 sps:$4 sm:$0xff]  }
  0x54   :  { %1323 = vmatpush1.bf16.msra.mxu1 %v3343_v23  ;;  %1283 = vmatprep.subr.bf16.mxu0 %v3344_v24  ;;  %v3376_v45 = vld [vmem:[#allocation8 + $0x384] ss:$16 sps:$4 sm:$0xff]   ;;  %v3379_v48 = vld [vmem:[#allocation8 + $0x380] ss:$16 sps:$4 sm:$0xff]   ;;  %v3425_v23 = vld [vmem:[#allocation8 + $0x88] ss:$16 sps:$4 sm:$0xff]  }
  0x55   :  { %1324 = vmatprep.subr.bf16.mxu1 %v3346_v25  ;;  %v3380_v51 = vld [vmem:[#allocation8 + $0x164] ss:$16 sps:$4 sm:$0xff]   ;;  %v3384_v54 = vld [vmem:[#allocation8 + $0x160] ss:$16 sps:$4 sm:$0xff]   ;;  %v3433_v25 = vld [vmem:[#allocation8 + $0x6c] ss:$16 sps:$4 sm:$0xff]  }
  0x56   :  { %v3382_v53 = vld [vmem:[#allocation8 + $0x364] ss:$16 sps:$4 sm:$0xff]   ;;  %v3385_v55 = vld [vmem:[#allocation8 + $0x360] ss:$16 sps:$4 sm:$0xff]  }
  0x57   :  { %1284 = vmatpush1.bf16.msra.mxu0 %v3348_v26  ;;  %v3386_v56 = vld [vmem:[#allocation8 + $0x144] ss:$16 sps:$4 sm:$0xff]   ;;  %v3390_v58 = vld [vmem:[#allocation8 + $0x140] ss:$16 sps:$4 sm:$0xff]  }
  0x58   :  { %1325 = vmatpush1.bf16.msra.mxu1 %v3349_v27  ;;  %1285 = vmatprep.subr.bf16.mxu0 %v3350_v28  ;;  %v3388_v57 = vld [vmem:[#allocation8 + $0x344] ss:$16 sps:$4 sm:$0xff]   ;;  %v3391_v59 = vld [vmem:[#allocation8 + $0x340] ss:$16 sps:$4 sm:$0xff]   ;;  %v3431_v27 = vld [vmem:[#allocation8 + $0x68] ss:$16 sps:$4 sm:$0xff]  }
  0x59   :  { %1326 = vmatprep.subr.bf16.mxu1 %v3352_v29  ;;  %v3392_v60 = vld [vmem:[#allocation8 + $0x124] ss:$16 sps:$4 sm:$0xff]   ;;  %v3396_v62 = vld [vmem:[#allocation8 + $0x120] ss:$16 sps:$4 sm:$0xff]   ;;  %v3439_v29 = vld [vmem:[#allocation8 + $0x4c] ss:$16 sps:$4 sm:$0xff]  }
  0x5a   :  { %v3394_v61 = vld [vmem:[#allocation8 + $0x324] ss:$16 sps:$4 sm:$0xff]   ;;  %v3397_v63 = vld [vmem:[#allocation8 + $0x320] ss:$16 sps:$4 sm:$0xff]  }
  0x5b   :  { %1286 = vmatpush1.bf16.msra.mxu0 %v3354_v30  ;;  %v3398_v0 = vld [vmem:[#allocation8 + $0x104] ss:$16 sps:$4 sm:$0xff]   ;;  %v3402_v2 = vld [vmem:[#allocation8 + $0x100] ss:$16 sps:$4 sm:$0xff]  }
  0x5c   :  { %1327 = vmatpush1.bf16.msra.mxu1 %v3355_v31  ;;  %1287 = vmatprep.subr.bf16.mxu0 %v3356_v32  ;;  %v3400_v1 = vld [vmem:[#allocation8 + $0x304] ss:$16 sps:$4 sm:$0xff]   ;;  %v3403_v3 = vld [vmem:[#allocation8 + $0x300] ss:$16 sps:$4 sm:$0xff]   ;;  %v3437_v31 = vld [vmem:[#allocation8 + $0x48] ss:$16 sps:$4 sm:$0xff]  }
  0x5d   :  { %1328 = vmatprep.subr.bf16.mxu1 %v3358_v33  ;;  %v107_v4 = vld [vmem:[#allocation3] sm:$0xff]  ;;  %v109_v5 = vld [vmem:[#allocation3 + $0x10] sm:$0xff]  ;;  %v3445_v33 = vld [vmem:[#allocation8 + $0x2c] ss:$16 sps:$4 sm:$0xff]  }
  0x5e   :  { %v3406_v6 = vld [vmem:[#allocation8 + $0x4e4] ss:$16 sps:$4 sm:$0xff]   ;;  %v4024_v8 = vpack.c.bf16 %v107_v4, %v107_v4  ;;  %v4026_v9 = vpack.c.bf16 %v109_v5, %v109_v5  ;;  %v3404_v10 = vld [vmem:[#allocation8 + $0x4e0] ss:$16 sps:$4 sm:$0xff]   ;;  %v3493_v4 = vld [vmem:[#allocation8 + $0x12c] ss:$16 sps:$4 sm:$0xff]  }
  0x5f   :  { %1288 = vmatpush2.bf16.msra.mxu0 %v3360_v34  ;;  %v3412_v12 = vld [vmem:[#allocation8 + $0x4c4] ss:$16 sps:$4 sm:$0xff]   ;;  %v3410_v14 = vld [vmem:[#allocation8 + $0x4c0] ss:$16 sps:$4 sm:$0xff]   ;;  %v112_v34 = vld [vmem:[#allocation3 + $0x28] sm:$0xff] }
  0x60   :  { %1329 = vmatpush2.bf16.msra.mxu1 %v3361_v35  ;;  %1289 = vmatprep.subr.bf16.mxu0 %v3362_v36  ;;  %v3418_v16 = vld [vmem:[#allocation8 + $0x4a4] ss:$16 sps:$4 sm:$0xff]   ;;  %v3416_v18 = vld [vmem:[#allocation8 + $0x4a0] ss:$16 sps:$4 sm:$0xff]   ;;  %v4031_v35 = vpack.c.bf16 %v112_v34, %v112_v34  ;;  %v3535_v34 = vld [vmem:[#allocation8 + $0x44c] ss:$16 sps:$4 sm:$0xff]  }
  0x61   :  { %1330 = vmatprep.subr.bf16.mxu1 %v3364_v37  ;;  %v3424_v20 = vld [vmem:[#allocation8 + $0x484] ss:$16 sps:$4 sm:$0xff]   ;;  %v3422_v22 = vld [vmem:[#allocation8 + $0x480] ss:$16 sps:$4 sm:$0xff]   ;;  %v3443_v37 = vld [vmem:[#allocation8 + $0x28] ss:$16 sps:$4 sm:$0xff]  }
  0x62   :  { %v3430_v24 = vld [vmem:[#allocation8 + $0x464] ss:$16 sps:$4 sm:$0xff]   ;;  %v3428_v26 = vld [vmem:[#allocation8 + $0x460] ss:$16 sps:$4 sm:$0xff]  }
  0x63   :  { %1290 = vmatpush2.bf16.msra.mxu0 %v3366_v38  ;;  %v3436_v28 = vld [vmem:[#allocation8 + $0x444] ss:$16 sps:$4 sm:$0xff]   ;;  %v3434_v30 = vld [vmem:[#allocation8 + $0x440] ss:$16 sps:$4 sm:$0xff]  }
  0x64   :  { %1331 = vmatpush2.bf16.msra.mxu1 %v3367_v39  ;;  %1291 = vmatprep.subr.bf16.mxu0 %v3368_v40  ;;  %v3442_v32 = vld [vmem:[#allocation8 + $0x424] ss:$16 sps:$4 sm:$0xff]   ;;  %v3440_v36 = vld [vmem:[#allocation8 + $0x420] ss:$16 sps:$4 sm:$0xff]   ;;  %v3451_v39 = vld [vmem:[#allocation8 + $0xc] ss:$16 sps:$4 sm:$0xff]  }
  0x65   :  { %1332 = vmatprep.subr.bf16.mxu1 %v3370_v41  ;;  %v3448_v38 = vld [vmem:[#allocation8 + $0x404] ss:$16 sps:$4 sm:$0xff]   ;;  %v3446_v40 = vld [vmem:[#allocation8 + $0x400] ss:$16 sps:$4 sm:$0xff]   ;;  %v3449_v41 = vld [vmem:[#allocation8 + $0x8] ss:$16 sps:$4 sm:$0xff]  }
  0x66   :  { %v3460_v46 = vld [vmem:[#allocation8 + $0x5c4] ss:$16 sps:$4 sm:$0xff]   ;;  %v3488_v5 = vld [vmem:[#allocation8 + $0x520] ss:$16 sps:$4 sm:$0xff]  }
  0x67   :  { %1292 = vmatpush2.bf16.msra.mxu0 %v3372_v42  ;;  %v3454_v42 = vld [vmem:[#allocation8 + $0x5e4] ss:$16 sps:$4 sm:$0xff]  }
  0x68   :  { %1333 = vmatpush2.bf16.msra.mxu1 %v3373_v43  ;;  %1293 = vmatprep.subr.bf16.mxu0 %v3374_v44  ;;  %v3457_v43 = vld [vmem:[#allocation8 + $0x1ec] ss:$16 sps:$4 sm:$0xff]   ;;  %v3452_v44 = vld [vmem:[#allocation8 + $0x5e0] ss:$16 sps:$4 sm:$0xff]   ;;  %v3466_v50 = vld [vmem:[#allocation8 + $0x5a4] ss:$16 sps:$4 sm:$0xff]  }
  0x69   :  { %1334 = vmatprep.subr.bf16.mxu1 %v3376_v45  ;;  %v3455_v45 = vld [vmem:[#allocation8 + $0x1e8] ss:$16 sps:$4 sm:$0xff]  }
  0x6b   :  { %1294 = vmatpush2.bf16.msra.mxu0 %v3378_v47  ;;  %v3463_v47 = vld [vmem:[#allocation8 + $0x1cc] ss:$16 sps:$4 sm:$0xff]  }
  0x6c   :  { %1335 = vmatpush2.bf16.msra.mxu1 %v3379_v48  ;;  %1295 = vmatprep.subr.bf16.mxu0 %v3380_v51  ;;  %v3458_v48 = vld [vmem:[#allocation8 + $0x5c0] ss:$16 sps:$4 sm:$0xff]   ;;  %v3469_v51 = vld [vmem:[#allocation8 + $0x1ac] ss:$16 sps:$4 sm:$0xff]  }
  0x6d   :  { %1336 = vmatprep.subr.bf16.mxu1 %v3382_v53  ;;  %v3464_v53 = vld [vmem:[#allocation8 + $0x5a0] ss:$16 sps:$4 sm:$0xff]  }
  0x6f   :  { %1296 = vmatpush2.bf16.msra.mxu0 %v3384_v54  ;;  %v3467_v54 = vld [vmem:[#allocation8 + $0x1a8] ss:$16 sps:$4 sm:$0xff]  }
  0x70   :  { %1337 = vmatpush2.bf16.msra.mxu1 %v3385_v55  ;;  %1297 = vmatprep.subr.bf16.mxu0 %v3386_v56  ;;  %v3472_v55 = vld [vmem:[#allocation8 + $0x584] ss:$16 sps:$4 sm:$0xff]   ;;  %v3475_v56 = vld [vmem:[#allocation8 + $0x18c] ss:$16 sps:$4 sm:$0xff]  }
  0x71   :  { %1338 = vmatprep.subr.bf16.mxu1 %v3388_v57  ;;  %v3470_v57 = vld [vmem:[#allocation8 + $0x580] ss:$16 sps:$4 sm:$0xff]  }
  0x73   :  { %1298 = vmatpush2.bf16.msra.mxu0 %v3390_v58  ;;  %v3473_v58 = vld [vmem:[#allocation8 + $0x188] ss:$16 sps:$4 sm:$0xff]  }
  0x74   :  { %1339 = vmatpush2.bf16.msra.mxu1 %v3391_v59  ;;  %1299 = vmatprep.subr.bf16.mxu0 %v3392_v60  ;;  %v3478_v59 = vld [vmem:[#allocation8 + $0x564] ss:$16 sps:$4 sm:$0xff]   ;;  %v3481_v60 = vld [vmem:[#allocation8 + $0x16c] ss:$16 sps:$4 sm:$0xff]  }
  0x75   :  { %1340 = vmatprep.subr.bf16.mxu1 %v3394_v61  ;;  %v3476_v61 = vld [vmem:[#allocation8 + $0x560] ss:$16 sps:$4 sm:$0xff]  }
  0x77   :  { %1300 = vmatpush2.bf16.msra.mxu0 %v3396_v62  ;;  %v3479_v62 = vld [vmem:[#allocation8 + $0x168] ss:$16 sps:$4 sm:$0xff]  }
  0x78   :  { %1341 = vmatpush2.bf16.msra.mxu1 %v3397_v63  ;;  %1301 = vmatprep.subr.bf16.mxu0 %v3398_v0  ;;  %v3484_v63 = vld [vmem:[#allocation8 + $0x544] ss:$16 sps:$4 sm:$0xff]   ;;  %v3487_v0 = vld [vmem:[#allocation8 + $0x14c] ss:$16 sps:$4 sm:$0xff]  }
  0x79   :  { %1342 = vmatprep.subr.bf16.mxu1 %v3400_v1  ;;  %v3482_v1 = vld [vmem:[#allocation8 + $0x540] ss:$16 sps:$4 sm:$0xff]  }
  0x7b   :  { %1302 = vmatpush2.bf16.msra.mxu0 %v3402_v2  ;;  %v3485_v2 = vld [vmem:[#allocation8 + $0x148] ss:$16 sps:$4 sm:$0xff]  }
  0x7c   :  { %1343 = vmatpush2.bf16.msra.mxu1 %v3403_v3  ;;  %1353 = vmatprep.subr.bf16.mxu0 %v3406_v6  ;;  %v3490_v3 = vld [vmem:[#allocation8 + $0x524] ss:$16 sps:$4 sm:$0xff]   ;;  %v3491_v6 = vld [vmem:[#allocation8 + $0x128] ss:$16 sps:$4 sm:$0xff]  }
  0x7d   :  { %1394 = vmatprep.subr.bf16.mxu1 %v3409_v7  ;;  %v3496_v7 = vld [vmem:[#allocation8 + $0x504] ss:$16 sps:$4 sm:$0xff]  }
  0x7e   :  { %1304 = vmatmul.mubr.bf16.vlgmr.msra.gmra.mxu0 %v4024_v8 }
  0x7f   :  { %1345 = vmatmul.mubr.bf16.vlgmr.msra.gmra.mxu1 %v4026_v9  ;;  %1354 = vmatpush1.bf16.msra.mxu0 %v3404_v10  ;;  %v3499_v10 = vld [vmem:[#allocation8 + $0x10c] ss:$16 sps:$4 sm:$0xff]  }
  0x80   :  { %1395 = vmatpush1.bf16.msra.mxu1 %v3407_v11  ;;  %1355 = vmatprep.subr.bf16.mxu0 %v3412_v12  ;;  %v3494_v11 = vld [vmem:[#allocation8 + $0x500] ss:$16 sps:$4 sm:$0xff]   ;;  %v3497_v12 = vld [vmem:[#allocation8 + $0x108] ss:$16 sps:$4 sm:$0xff]  }
  0x81   :  { %1396 = vmatprep.subr.bf16.mxu1 %v3415_v13  ;;  %1426 = vmatprep.mubr.bf16.mxu1 %v4018_v49  ;;  %v3461_v49 = vld [vmem:[#allocation8 + $0x1c8] ss:$16 sps:$4 sm:$0xff]   ;;  %v111_v13 = vld [vmem:[#allocation3 + $0x20] sm:$0xff] }
  0x82   :  { %1385 = vmatprep.mubr.bf16.mxu0 %v4031_v35 }
  0x83   :  { %1356 = vmatpush1.bf16.msra.mxu0 %v3410_v14  ;;  %v3502_v14 = vld [vmem:[#allocation8 + $0x2ec] ss:$16 sps:$4 sm:$0xff]  }
  0x84   :  { %1397 = vmatpush1.bf16.msra.mxu1 %v3413_v15  ;;  %1357 = vmatprep.subr.bf16.mxu0 %v3418_v16  ;;  %v3505_v15 = vld [vmem:[#allocation8 + $0x4ec] ss:$16 sps:$4 sm:$0xff]   ;;  %v4034_v16 = vpack.c.bf16 %v111_v13, %v111_v13 }
  0x85   :  { %1398 = vmatprep.subr.bf16.mxu1 %v3421_v17  ;;  %v3500_v17 = vld [vmem:[#allocation8 + $0x2e8] ss:$16 sps:$4 sm:$0xff]   ;;  %v3595_v13 = vld [vmem:[#allocation8 + $0x50c] ss:$16 sps:$4 sm:$0xff]  }
  0x87   :  { %1358 = vmatpush1.bf16.msra.mxu0 %v3416_v18  ;;  %v3503_v18 = vld [vmem:[#allocation8 + $0x4e8] ss:$16 sps:$4 sm:$0xff]  }
  0x88   :  { %1399 = vmatpush1.bf16.msra.mxu1 %v3419_v19  ;;  %1359 = vmatprep.subr.bf16.mxu0 %v3424_v20  ;;  %v3508_v19 = vld [vmem:[#allocation8 + $0x2cc] ss:$16 sps:$4 sm:$0xff]  }
  0x89   :  { %1400 = vmatprep.subr.bf16.mxu1 %v3427_v21  ;;  %v3511_v20 = vld [vmem:[#allocation8 + $0x4cc] ss:$16 sps:$4 sm:$0xff]   ;;  %v3506_v21 = vld [vmem:[#allocation8 + $0x2c8] ss:$16 sps:$4 sm:$0xff]  }
  0x8b   :  { %1360 = vmatpush1.bf16.msra.mxu0 %v3422_v22  ;;  %v3509_v22 = vld [vmem:[#allocation8 + $0x4c8] ss:$16 sps:$4 sm:$0xff]  }
  0x8c   :  { %1401 = vmatpush1.bf16.msra.mxu1 %v3425_v23  ;;  %1361 = vmatprep.subr.bf16.mxu0 %v3430_v24  ;;  %v3514_v23 = vld [vmem:[#allocation8 + $0x2ac] ss:$16 sps:$4 sm:$0xff]  }
  0x8d   :  { %1402 = vmatprep.subr.bf16.mxu1 %v3433_v25  ;;  %v3517_v24 = vld [vmem:[#allocation8 + $0x4ac] ss:$16 sps:$4 sm:$0xff]   ;;  %v3512_v25 = vld [vmem:[#allocation8 + $0x2a8] ss:$16 sps:$4 sm:$0xff]  }
  0x8f   :  { %1362 = vmatpush1.bf16.msra.mxu0 %v3428_v26  ;;  %v3515_v26 = vld [vmem:[#allocation8 + $0x4a8] ss:$16 sps:$4 sm:$0xff]  }
  0x90   :  { %1403 = vmatpush1.bf16.msra.mxu1 %v3431_v27  ;;  %1363 = vmatprep.subr.bf16.mxu0 %v3436_v28  ;;  %v3520_v27 = vld [vmem:[#allocation8 + $0x28c] ss:$16 sps:$4 sm:$0xff]  }
  0x91   :  { %1404 = vmatprep.subr.bf16.mxu1 %v3439_v29  ;;  %v3523_v28 = vld [vmem:[#allocation8 + $0x48c] ss:$16 sps:$4 sm:$0xff]   ;;  %v3521_v29 = vld [vmem:[#allocation8 + $0x488] ss:$16 sps:$4 sm:$0xff]  }
  0x93   :  { %1364 = vmatpush1.bf16.msra.mxu0 %v3434_v30  ;;  %v3526_v30 = vld [vmem:[#allocation8 + $0x26c] ss:$16 sps:$4 sm:$0xff]  }
  0x94   :  { %1405 = vmatpush1.bf16.msra.mxu1 %v3437_v31  ;;  %1365 = vmatprep.subr.bf16.mxu0 %v3442_v32  ;;  %v3529_v31 = vld [vmem:[#allocation8 + $0x46c] ss:$16 sps:$4 sm:$0xff]   ;;  %v3524_v32 = vld [vmem:[#allocation8 + $0x268] ss:$16 sps:$4 sm:$0xff]  }
  0x95   :  { %1406 = vmatprep.subr.bf16.mxu1 %v3445_v33  ;;  %v3532_v33 = vld [vmem:[#allocation8 + $0x24c] ss:$16 sps:$4 sm:$0xff]  }
  0x97   :  { %1366 = vmatpush1.bf16.msra.mxu0 %v3440_v36  ;;  %v3533_v36 = vld [vmem:[#allocation8 + $0x448] ss:$16 sps:$4 sm:$0xff]  }
  0x98   :  { %1407 = vmatpush1.bf16.msra.mxu1 %v3443_v37  ;;  %1367 = vmatprep.subr.bf16.mxu0 %v3448_v38  ;;  %v3538_v37 = vld [vmem:[#allocation8 + $0x22c] ss:$16 sps:$4 sm:$0xff]  }
  0x99   :  { %1408 = vmatprep.subr.bf16.mxu1 %v3451_v39  ;;  %v3541_v38 = vld [vmem:[#allocation8 + $0x42c] ss:$16 sps:$4 sm:$0xff]   ;;  %v3536_v39 = vld [vmem:[#allocation8 + $0x228] ss:$16 sps:$4 sm:$0xff]  }
  0x9b   :  { %1368 = vmatpush1.bf16.msra.mxu0 %v3446_v40  ;;  %v3539_v40 = vld [vmem:[#allocation8 + $0x428] ss:$16 sps:$4 sm:$0xff]  }
  0x9c   :  { %1409 = vmatpush1.bf16.msra.mxu1 %v3449_v41  ;;  %1369 = vmatprep.subr.bf16.mxu0 %v3454_v42  ;;  %v3544_v41 = vld [vmem:[#allocation8 + $0x20c] ss:$16 sps:$4 sm:$0xff]  }
  0x9d   :  { %1410 = vmatprep.subr.bf16.mxu1 %v3457_v43  ;;  %v3547_v42 = vld [vmem:[#allocation8 + $0x40c] ss:$16 sps:$4 sm:$0xff]   ;;  %v3542_v43 = vld [vmem:[#allocation8 + $0x208] ss:$16 sps:$4 sm:$0xff]  }
  0x9f   :  { %1370 = vmatpush2.bf16.msra.mxu0 %v3452_v44  ;;  %v3545_v44 = vld [vmem:[#allocation8 + $0x408] ss:$16 sps:$4 sm:$0xff]  }
  0xa0   :  { %1411 = vmatpush2.bf16.msra.mxu1 %v3455_v45  ;;  %1371 = vmatprep.subr.bf16.mxu0 %v3460_v46  ;;  %v3550_v45 = vld [vmem:[#allocation8 + $0x3ec] ss:$16 sps:$4 sm:$0xff]  }
  0xa1   :  { %1412 = vmatprep.subr.bf16.mxu1 %v3463_v47  ;;  %v3553_v46 = vld [vmem:[#allocation8 + $0x5ec] ss:$16 sps:$4 sm:$0xff]   ;;  %v3548_v47 = vld [vmem:[#allocation8 + $0x3e8] ss:$16 sps:$4 sm:$0xff]  }
  0xa3   :  { %1372 = vmatpush2.bf16.msra.mxu0 %v3458_v48  ;;  %v3551_v48 = vld [vmem:[#allocation8 + $0x5e8] ss:$16 sps:$4 sm:$0xff]  }
  0xa4   :  { %1413 = vmatpush2.bf16.msra.mxu1 %v3461_v49  ;;  %1373 = vmatprep.subr.bf16.mxu0 %v3466_v50  ;;  %v3556_v49 = vld [vmem:[#allocation8 + $0x3cc] ss:$16 sps:$4 sm:$0xff]  }
  0xa5   :  { %1414 = vmatprep.subr.bf16.mxu1 %v3469_v51  ;;  %v3559_v50 = vld [vmem:[#allocation8 + $0x5cc] ss:$16 sps:$4 sm:$0xff]   ;;  %v3554_v51 = vld [vmem:[#allocation8 + $0x3c8] ss:$16 sps:$4 sm:$0xff]  }
  0xa7   :  { %1374 = vmatpush2.bf16.msra.mxu0 %v3464_v53  ;;  %v3557_v53 = vld [vmem:[#allocation8 + $0x5c8] ss:$16 sps:$4 sm:$0xff]  }
  0xa8   :  { %1415 = vmatpush2.bf16.msra.mxu1 %v3467_v54  ;;  %1375 = vmatprep.subr.bf16.mxu0 %v3472_v55  ;;  %v3562_v54 = vld [vmem:[#allocation8 + $0x3ac] ss:$16 sps:$4 sm:$0xff]  }
  0xa9   :  { %1416 = vmatprep.subr.bf16.mxu1 %v3475_v56  ;;  %v3565_v55 = vld [vmem:[#allocation8 + $0x5ac] ss:$16 sps:$4 sm:$0xff]   ;;  %v3560_v56 = vld [vmem:[#allocation8 + $0x3a8] ss:$16 sps:$4 sm:$0xff]  }
  0xab   :  { %1376 = vmatpush2.bf16.msra.mxu0 %v3470_v57  ;;  %v3563_v57 = vld [vmem:[#allocation8 + $0x5a8] ss:$16 sps:$4 sm:$0xff]  }
  0xac   :  { %1417 = vmatpush2.bf16.msra.mxu1 %v3473_v58  ;;  %1377 = vmatprep.subr.bf16.mxu0 %v3478_v59  ;;  %v3568_v58 = vld [vmem:[#allocation8 + $0x38c] ss:$16 sps:$4 sm:$0xff]  }
  0xad   :  { %1418 = vmatprep.subr.bf16.mxu1 %v3481_v60  ;;  %v3571_v59 = vld [vmem:[#allocation8 + $0x58c] ss:$16 sps:$4 sm:$0xff]   ;;  %v3566_v60 = vld [vmem:[#allocation8 + $0x388] ss:$16 sps:$4 sm:$0xff]  }
  0xaf   :  { %1378 = vmatpush2.bf16.msra.mxu0 %v3476_v61  ;;  %v3569_v61 = vld [vmem:[#allocation8 + $0x588] ss:$16 sps:$4 sm:$0xff]  }
  0xb0   :  { %1419 = vmatpush2.bf16.msra.mxu1 %v3479_v62  ;;  %1379 = vmatprep.subr.bf16.mxu0 %v3484_v63  ;;  %v3574_v62 = vld [vmem:[#allocation8 + $0x36c] ss:$16 sps:$4 sm:$0xff]  }
  0xb1   :  { %1420 = vmatprep.subr.bf16.mxu1 %v3487_v0  ;;  %v3577_v63 = vld [vmem:[#allocation8 + $0x56c] ss:$16 sps:$4 sm:$0xff]   ;;  %v3572_v0 = vld [vmem:[#allocation8 + $0x368] ss:$16 sps:$4 sm:$0xff]  }
  0xb3   :  { %1380 = vmatpush2.bf16.msra.mxu0 %v3482_v1  ;;  %v3575_v1 = vld [vmem:[#allocation8 + $0x568] ss:$16 sps:$4 sm:$0xff]  }
  0xb4   :  { %1421 = vmatpush2.bf16.msra.mxu1 %v3485_v2  ;;  %1381 = vmatprep.subr.bf16.mxu0 %v3490_v3  ;;  %v3580_v2 = vld [vmem:[#allocation8 + $0x34c] ss:$16 sps:$4 sm:$0xff]  }
  0xb5   :  { %1422 = vmatprep.subr.bf16.mxu1 %v3493_v4  ;;  %v3583_v3 = vld [vmem:[#allocation8 + $0x54c] ss:$16 sps:$4 sm:$0xff]   ;;  %v3578_v4 = vld [vmem:[#allocation8 + $0x348] ss:$16 sps:$4 sm:$0xff]  }
  0xb7   :  { %1382 = vmatpush2.bf16.msra.mxu0 %v3488_v5  ;;  %v3581_v5 = vld [vmem:[#allocation8 + $0x548] ss:$16 sps:$4 sm:$0xff]  }
  0xb8   :  { %1423 = vmatpush2.bf16.msra.mxu1 %v3491_v6  ;;  %1383 = vmatprep.subr.bf16.mxu0 %v3496_v7  ;;  %v3586_v6 = vld [vmem:[#allocation8 + $0x32c] ss:$16 sps:$4 sm:$0xff]  }
  0xb9   :  { %1424 = vmatprep.subr.bf16.mxu1 %v3499_v10  ;;  %v3589_v7 = vld [vmem:[#allocation8 + $0x52c] ss:$16 sps:$4 sm:$0xff]   ;;  %v3584_v10 = vld [vmem:[#allocation8 + $0x328] ss:$16 sps:$4 sm:$0xff]  }
  0xbb   :  { %1384 = vmatpush2.bf16.msra.mxu0 %v3494_v11  ;;  %v3587_v11 = vld [vmem:[#allocation8 + $0x528] ss:$16 sps:$4 sm:$0xff]  }
  0xbc   :  { %1425 = vmatpush2.bf16.msra.mxu1 %v3497_v12  ;;  %1435 = vmatprep.subr.bf16.mxu0 %v3502_v14  ;;  %v3592_v12 = vld [vmem:[#allocation8 + $0x30c] ss:$16 sps:$4 sm:$0xff]   ;;  %v3590_v14 = vld [vmem:[#allocation8 + $0x308] ss:$16 sps:$4 sm:$0xff]  }
  0xbd   :  { %1476 = vmatprep.subr.bf16.mxu1 %v3505_v15  ;;  %v3593_v15 = vld [vmem:[#allocation8 + $0x508] ss:$16 sps:$4 sm:$0xff]  }
  0xbe   :  { %1386 = vmatmul.mubr.bf16.vlgmr.msra.gmra.mxu0 %v4034_v16 }
  0xbf   :  { %1427 = vmatmul.mubr.bf16.vlgmr.msra.gmra.mxu1 %v4024_v8  ;;  %1436 = vmatpush1.bf16.msra.mxu0 %v3500_v17  ;;  %v3518_v8 = vld [vmem:[#allocation8 + $0x288] ss:$16 sps:$4 sm:$0xff]   ;;  %v3598_v17 = vld [vmem:[#allocation9 + $0xe4] ss:$16 sps:$4 sm:$0xff]  }
  0xc0   :  { %1477 = vmatpush1.bf16.msra.mxu1 %v3503_v18  ;;  %1437 = vmatprep.subr.bf16.mxu0 %v3508_v19  ;;  %v3596_v18 = vld [vmem:[#allocation9 + $0xe0] ss:$16 sps:$4 sm:$0xff]   ;;  %v3601_v19 = vld [vmem:[#allocation9 + $0xc4] ss:$16 sps:$4 sm:$0xff]  }
  0xc1   :  { %1478 = vmatprep.subr.bf16.mxu1 %v3511_v20  ;;  %1467 = vmatprep.mubr.bf16.mxu0 %v4020_v52  ;;  %v3527_v52 = vld [vmem:[#allocation8 + $0x468] ss:$16 sps:$4 sm:$0xff]   ;;  %v3599_v20 = vld [vmem:[#allocation9 + $0xc0] ss:$16 sps:$4 sm:$0xff]  }
  0xc2   :  { %1508 = vmatprep.mubr.bf16.mxu1 %v4031_v35  ;;  %v3530_v35 = vld [vmem:[#allocation8 + $0x248] ss:$16 sps:$4 sm:$0xff]  }
  0xc3   :  { %1438 = vmatpush1.bf16.msra.mxu0 %v3506_v21  ;;  %v3604_v21 = vld [vmem:[#allocation9 + $0xa4] ss:$16 sps:$4 sm:$0xff]  }
  0xc4   :  { %1479 = vmatpush1.bf16.msra.mxu1 %v3509_v22  ;;  %1439 = vmatprep.subr.bf16.mxu0 %v3514_v23  ;;  %v3602_v22 = vld [vmem:[#allocation9 + $0xa0] ss:$16 sps:$4 sm:$0xff]   ;;  %v3607_v23 = vld [vmem:[#allocation9 + $0x84] ss:$16 sps:$4 sm:$0xff]  }
  0xc5   :  { %1480 = vmatprep.subr.bf16.mxu1 %v3517_v24  ;;  %v3605_v24 = vld [vmem:[#allocation9 + $0x80] ss:$16 sps:$4 sm:$0xff]  }
  0xc7   :  { %1440 = vmatpush1.bf16.msra.mxu0 %v3512_v25  ;;  %v3610_v25 = vld [vmem:[#allocation9 + $0x64] ss:$16 sps:$4 sm:$0xff]  }
  0xc8   :  { %1481 = vmatpush1.bf16.msra.mxu1 %v3515_v26  ;;  %1441 = vmatprep.subr.bf16.mxu0 %v3520_v27  ;;  %v3649_v26 = vld [vmem:[#allocation9 + $0x2e4] ss:$16 sps:$4 sm:$0xff]   ;;  %v3608_v27 = vld [vmem:[#allocation9 + $0x60] ss:$16 sps:$4 sm:$0xff]  }
  0xc9   :  { %1482 = vmatprep.subr.bf16.mxu1 %v3523_v28  ;;  %v3647_v28 = vld [vmem:[#allocation9 + $0x2e0] ss:$16 sps:$4 sm:$0xff]  }
  0xcb   :  { %1442 = vmatpush1.bf16.msra.mxu0 %v3518_v8  ;;  %v3611_v8 = vld [vmem:[#allocation9 + $0x40] ss:$16 sps:$4 sm:$0xff]  }
  0xcc   :  { %1483 = vmatpush1.bf16.msra.mxu1 %v3521_v29  ;;  %1443 = vmatprep.subr.bf16.mxu0 %v3526_v30  ;;  %v3653_v29 = vld [vmem:[#allocation9 + $0x2c0] ss:$16 sps:$4 sm:$0xff]   ;;  %v3616_v30 = vld [vmem:[#allocation9 + $0x24] ss:$16 sps:$4 sm:$0xff]  }
  0xcd   :  { %1484 = vmatprep.subr.bf16.mxu1 %v3529_v31  ;;  %v3661_v31 = vld [vmem:[#allocation9 + $0x2a4] ss:$16 sps:$4 sm:$0xff]  }
  0xcf   :  { %1444 = vmatpush1.bf16.msra.mxu0 %v3524_v32  ;;  %v3614_v32 = vld [vmem:[#allocation9 + $0x20] ss:$16 sps:$4 sm:$0xff]  }
  0xd0   :  { %1485 = vmatpush1.bf16.msra.mxu1 %v3527_v52  ;;  %1445 = vmatprep.subr.bf16.mxu0 %v3532_v33  ;;  %v3659_v52 = vld [vmem:[#allocation9 + $0x2a0] ss:$16 sps:$4 sm:$0xff]   ;;  %v3619_v33 = vld [vmem:[#allocation9 + $0x4] ss:$16 sps:$4 sm:$0xff]  }
  0xd1   :  { %1486 = vmatprep.subr.bf16.mxu1 %v3535_v34  ;;  %v3667_v34 = vld [vmem:[#allocation9 + $0x284] ss:$16 sps:$4 sm:$0xff]  }
  0xd3   :  { %1446 = vmatpush1.bf16.msra.mxu0 %v3530_v35  ;;  %v3617_v35 = vld [vmem:[#allocation9] ss:$16 sps:$4 sm:$0xff]  }
  0xd4   :  { %1487 = vmatpush1.bf16.msra.mxu1 %v3533_v36  ;;  %1447 = vmatprep.subr.bf16.mxu0 %v3538_v37  ;;  %v3665_v36 = vld [vmem:[#allocation9 + $0x280] ss:$16 sps:$4 sm:$0xff]   ;;  %v3622_v37 = vld [vmem:[#allocation9 + $0x1e4] ss:$16 sps:$4 sm:$0xff]  }
  0xd5   :  { %1488 = vmatprep.subr.bf16.mxu1 %v3541_v38  ;;  %v3673_v38 = vld [vmem:[#allocation9 + $0x264] ss:$16 sps:$4 sm:$0xff]  }
  0xd7   :  { %1448 = vmatpush1.bf16.msra.mxu0 %v3536_v39  ;;  %v3620_v39 = vld [vmem:[#allocation9 + $0x1e0] ss:$16 sps:$4 sm:$0xff]  }
  0xd8   :  { %1489 = vmatpush1.bf16.msra.mxu1 %v3539_v40  ;;  %1449 = vmatprep.subr.bf16.mxu0 %v3544_v41  ;;  %v3671_v40 = vld [vmem:[#allocation9 + $0x260] ss:$16 sps:$4 sm:$0xff]   ;;  %v3625_v41 = vld [vmem:[#allocation9 + $0x1c4] ss:$16 sps:$4 sm:$0xff]  }
  0xd9   :  { %1490 = vmatprep.subr.bf16.mxu1 %v3547_v42  ;;  %v3679_v42 = vld [vmem:[#allocation9 + $0x244] ss:$16 sps:$4 sm:$0xff]  }
  0xdb   :  { %1450 = vmatpush1.bf16.msra.mxu0 %v3542_v43  ;;  %v3623_v43 = vld [vmem:[#allocation9 + $0x1c0] ss:$16 sps:$4 sm:$0xff]  }
  0xdc   :  { %1491 = vmatpush1.bf16.msra.mxu1 %v3545_v44  ;;  %1451 = vmatprep.subr.bf16.mxu0 %v3550_v45  ;;  %v3677_v44 = vld [vmem:[#allocation9 + $0x240] ss:$16 sps:$4 sm:$0xff]   ;;  %v3628_v45 = vld [vmem:[#allocation9 + $0x1a4] ss:$16 sps:$4 sm:$0xff]  }
  0xdd   :  { %1492 = vmatprep.subr.bf16.mxu1 %v3553_v46  ;;  %v3685_v46 = vld [vmem:[#allocation9 + $0x224] ss:$16 sps:$4 sm:$0xff]  }
  0xdf   :  { %1452 = vmatpush2.bf16.msra.mxu0 %v3548_v47  ;;  %v3626_v47 = vld [vmem:[#allocation9 + $0x1a0] ss:$16 sps:$4 sm:$0xff]  }
  0xe0   :  { %1493 = vmatpush2.bf16.msra.mxu1 %v3551_v48  ;;  %1453 = vmatprep.subr.bf16.mxu0 %v3556_v49  ;;  %v3683_v48 = vld [vmem:[#allocation9 + $0x220] ss:$16 sps:$4 sm:$0xff]   ;;  %v3631_v49 = vld [vmem:[#allocation9 + $0x184] ss:$16 sps:$4 sm:$0xff]  }
  0xe1   :  { %1494 = vmatprep.subr.bf16.mxu1 %v3559_v50  ;;  %v3691_v50 = vld [vmem:[#allocation9 + $0x204] ss:$16 sps:$4 sm:$0xff]  }
  0xe3   :  { %1454 = vmatpush2.bf16.msra.mxu0 %v3554_v51  ;;  %v3629_v51 = vld [vmem:[#allocation9 + $0x180] ss:$16 sps:$4 sm:$0xff]  }
  0xe4   :  { %1495 = vmatpush2.bf16.msra.mxu1 %v3557_v53  ;;  %1455 = vmatprep.subr.bf16.mxu0 %v3562_v54  ;;  %v3689_v53 = vld [vmem:[#allocation9 + $0x200] ss:$16 sps:$4 sm:$0xff]   ;;  %v3634_v54 = vld [vmem:[#allocation9 + $0x164] ss:$16 sps:$4 sm:$0xff]  }
  0xe5   :  { %1496 = vmatprep.subr.bf16.mxu1 %v3565_v55  ;;  %v3697_v55 = vld [vmem:[#allocation9 + $0x3e4] ss:$16 sps:$4 sm:$0xff]  }
  0xe7   :  { %1456 = vmatpush2.bf16.msra.mxu0 %v3560_v56  ;;  %v3632_v56 = vld [vmem:[#allocation9 + $0x160] ss:$16 sps:$4 sm:$0xff]  }
  0xe8   :  { %1497 = vmatpush2.bf16.msra.mxu1 %v3563_v57  ;;  %1457 = vmatprep.subr.bf16.mxu0 %v3568_v58  ;;  %v3695_v57 = vld [vmem:[#allocation9 + $0x3e0] ss:$16 sps:$4 sm:$0xff]   ;;  %v3637_v58 = vld [vmem:[#allocation9 + $0x144] ss:$16 sps:$4 sm:$0xff]  }
  0xe9   :  { %1498 = vmatprep.subr.bf16.mxu1 %v3571_v59  ;;  %v3703_v59 = vld [vmem:[#allocation9 + $0x3c4] ss:$16 sps:$4 sm:$0xff]  }
  0xeb   :  { %1458 = vmatpush2.bf16.msra.mxu0 %v3566_v60  ;;  %v3635_v60 = vld [vmem:[#allocation9 + $0x140] ss:$16 sps:$4 sm:$0xff]  }
  0xec   :  { %1499 = vmatpush2.bf16.msra.mxu1 %v3569_v61  ;;  %1459 = vmatprep.subr.bf16.mxu0 %v3574_v62  ;;  %v3701_v61 = vld [vmem:[#allocation9 + $0x3c0] ss:$16 sps:$4 sm:$0xff]   ;;  %v3640_v62 = vld [vmem:[#allocation9 + $0x124] ss:$16 sps:$4 sm:$0xff]  }
  0xed   :  { %1500 = vmatprep.subr.bf16.mxu1 %v3577_v63  ;;  %v3709_v63 = vld [vmem:[#allocation9 + $0x3a4] ss:$16 sps:$4 sm:$0xff]  }
  0xef   :  { %1460 = vmatpush2.bf16.msra.mxu0 %v3572_v0  ;;  %v3638_v0 = vld [vmem:[#allocation9 + $0x120] ss:$16 sps:$4 sm:$0xff]  }
  0xf0   :  { %1501 = vmatpush2.bf16.msra.mxu1 %v3575_v1  ;;  %1461 = vmatprep.subr.bf16.mxu0 %v3580_v2  ;;  %v3707_v1 = vld [vmem:[#allocation9 + $0x3a0] ss:$16 sps:$4 sm:$0xff]   ;;  %v3643_v2 = vld [vmem:[#allocation9 + $0x104] ss:$16 sps:$4 sm:$0xff]  }
  0xf1   :  { %1502 = vmatprep.subr.bf16.mxu1 %v3583_v3  ;;  %v3715_v3 = vld [vmem:[#allocation9 + $0x384] ss:$16 sps:$4 sm:$0xff]  }
  0xf3   :  { %1462 = vmatpush2.bf16.msra.mxu0 %v3578_v4  ;;  %v3641_v4 = vld [vmem:[#allocation9 + $0x100] ss:$16 sps:$4 sm:$0xff]  }
  0xf4   :  { %1503 = vmatpush2.bf16.msra.mxu1 %v3581_v5  ;;  %1463 = vmatprep.subr.bf16.mxu0 %v3586_v6  ;;  %v3713_v5 = vld [vmem:[#allocation9 + $0x380] ss:$16 sps:$4 sm:$0xff]   ;;  %v3646_v6 = vld [vmem:[#allocation9 + $0xec] ss:$16 sps:$4 sm:$0xff]  }
  0xf5   :  { %1504 = vmatprep.subr.bf16.mxu1 %v3589_v7  ;;  %v3721_v7 = vld [vmem:[#allocation9 + $0x364] ss:$16 sps:$4 sm:$0xff]  }
  0xf7   :  { %1464 = vmatpush2.bf16.msra.mxu0 %v3584_v10  ;;  %v3719_v10 = vld [vmem:[#allocation9 + $0x360] ss:$16 sps:$4 sm:$0xff]  }
  0xf8   :  { %1505 = vmatpush2.bf16.msra.mxu1 %v3587_v11  ;;  %1465 = vmatprep.subr.bf16.mxu0 %v3592_v12 }
  0xf9   :  { %1506 = vmatprep.subr.bf16.mxu1 %v3595_v13  ;;  %v3727_v13 = vld [vmem:[#allocation9 + $0x344] ss:$16 sps:$4 sm:$0xff]  }
  0xfb   :  { %1466 = vmatpush2.bf16.msra.mxu0 %v3590_v14 }
  0xfc   :  { %1507 = vmatpush2.bf16.msra.mxu1 %v3593_v15  ;;  %2360 = vmatprep.subr.bf16.mxu0 %v3598_v17  ;;  %v3725_v15 = vld [vmem:[#allocation9 + $0x340] ss:$16 sps:$4 sm:$0xff]  }
  0xfd   :  { %2401 = vmatprep.subr.bf16.mxu1 %v3649_v26  ;;  %v3737_v26 = vld [vmem:[#allocation9 + $0x300] ss:$16 sps:$4 sm:$0xff]  }
  0xfe   :  { %1468 = vmatmul.mubr.bf16.vlgmr.msra.gmra.mxu0 %v4026_v9  ;;  %v3613_v9 = vld [vmem:[#allocation9 + $0x44] ss:$16 sps:$4 sm:$0xff]  }
  0xff   :  { %1509 = vmatmul.mubr.bf16.vlgmr.msra.gmra.mxu1 %v4034_v16  ;;  %2361 = vmatpush1.bf16.msra.mxu0 %v3596_v18  ;;  %v3655_v16 = vld [vmem:[#allocation9 + $0x2c4] ss:$16 sps:$4 sm:$0xff]  }
 0x100   :  { %2362 = vmatprep.subr.bf16.mxu0 %v3601_v19  ;;  %2402 = vmatpush1.bf16.msra.mxu1 %v3647_v28  ;;  %v1534_v28 = vlaneseq }
 0x101   :  { %2403 = vmatprep.subr.bf16.mxu1 %v3655_v16 }
 0x103   :  { %2363 = vmatpush1.bf16.msra.mxu0 %v3599_v20 }
 0x104   :  { %2364 = vmatprep.subr.bf16.mxu0 %v3604_v21  ;;  %2404 = vmatpush1.bf16.msra.mxu1 %v3653_v29  ;;  %v3733_v21 = vld [vmem:[#allocation9 + $0x324] ss:$16 sps:$4 sm:$0xff]  }
 0x105   :  { %2405 = vmatprep.subr.bf16.mxu1 %v3661_v31 }
 0x107   :  { %2365 = vmatpush1.bf16.msra.mxu0 %v3602_v22  ;;  %v3731_v22 = vld [vmem:[#allocation9 + $0x320] ss:$16 sps:$4 sm:$0xff]  }
 0x108   :  { %2366 = vmatprep.subr.bf16.mxu0 %v3607_v23  ;;  %2406 = vmatpush1.bf16.msra.mxu1 %v3659_v52 }
 0x109   :  { %2407 = vmatprep.subr.bf16.mxu1 %v3667_v34 }
 0x10b   :  { %2367 = vmatpush1.bf16.msra.mxu0 %v3605_v24 }
 0x10c   :  { %2368 = vmatprep.subr.bf16.mxu0 %v3610_v25  ;;  %2408 = vmatpush1.bf16.msra.mxu1 %v3665_v36  ;;  %v3739_v25 = vld [vmem:[#allocation9 + $0x304] ss:$16 sps:$4 sm:$0xff]  }
 0x10d   :  { %2409 = vmatprep.subr.bf16.mxu1 %v3673_v38  ;;  %v1558_v38 = vld [vmem:[#allocation6] sm:$0xff] }
 0x10f   :  { %2369 = vmatpush1.bf16.msra.mxu0 %v3608_v27  ;;  %v3742_v27 = vld [vmem:[#allocation9 + $0x2ec] ss:$16 sps:$4 sm:$0xff]  }
 0x110   :  { %2370 = vmatprep.subr.bf16.mxu0 %v3613_v9  ;;  %2410 = vmatpush1.bf16.msra.mxu1 %v3671_v40  ;;  %v4042_v9 = vshrl.u32 %v1534_v28, 7 }
 0x111   :  { %2411 = vmatprep.subr.bf16.mxu1 %v3679_v42  ;;  %v1559_v42 = vld [vmem:[#allocation6 + $0x8] sm:$0xff] }
 0x112   :  { %v1536_v16 = vsub.s32 0, %v4042_v9  ;;  %v1540_v29 = vsub.s32 1, %v4042_v9 }
 0x113   :  { %2371 = vmatpush1.bf16.msra.mxu0 %v3611_v8  ;;  %v4048_v8 = vld [vmem:[%s4099_s3] sm:$0xf] }
 0x114   :  { %2372 = vmatprep.subr.bf16.mxu0 %v3616_v30  ;;  %2412 = vmatpush1.bf16.msra.mxu1 %v3677_v44  ;;  %v1537_v30 = vrot.slane %v4048_v8, %v1536_v16  ;;  %v1541_v34 = vrot.slane %v4048_v8, %v1540_v29 }
 0x115   :  { %2413 = vmatprep.subr.bf16.mxu1 %v3685_v46 }
 0x117   :  { %2373 = vmatpush1.bf16.msra.mxu0 %v3614_v32 }
 0x118   :  { %2374 = vmatprep.subr.bf16.mxu0 %v3619_v33  ;;  %2414 = vmatpush1.bf16.msra.mxu1 %v3683_v48 }
 0x119   :  { %2415 = vmatprep.subr.bf16.mxu1 %v3691_v50 }
 0x11b   :  { %2375 = vmatpush1.bf16.msra.mxu0 %v3617_v35 }
 0x11c   :  { %2376 = vmatprep.subr.bf16.mxu0 %v3622_v37  ;;  %2416 = vmatpush1.bf16.msra.mxu1 %v3689_v53  ;;  %v3650_v53 = vld [vmem:[#allocation9 + $0xc8] ss:$16 sps:$4 sm:$0xff]  }
 0x11d   :  { %2417 = vmatprep.subr.bf16.mxu1 %v3697_v55  ;;  %v3656_v55 = vld [vmem:[#allocation9 + $0xa8] ss:$16 sps:$4 sm:$0xff]  }
 0x11f   :  { %2377 = vmatpush2.bf16.msra.mxu0 %v3620_v39 }
 0x120   :  { %2378 = vmatprep.subr.bf16.mxu0 %v3625_v41  ;;  %2418 = vmatpush2.bf16.msra.mxu1 %v3695_v57  ;;  %v3662_v57 = vld [vmem:[#allocation9 + $0x88] ss:$16 sps:$4 sm:$0xff]  }
 0x121   :  { %2419 = vmatprep.subr.bf16.mxu1 %v3703_v59  ;;  %v3668_v59 = vld [vmem:[#allocation9 + $0x68] ss:$16 sps:$4 sm:$0xff]  }
 0x123   :  { %2379 = vmatpush2.bf16.msra.mxu0 %v3623_v43 }
 0x124   :  { %2380 = vmatprep.subr.bf16.mxu0 %v3628_v45  ;;  %2420 = vmatpush2.bf16.msra.mxu1 %v3701_v61  ;;  %v3674_v61 = vld [vmem:[#allocation9 + $0x48] ss:$16 sps:$4 sm:$0xff]  }
 0x125   :  { %2421 = vmatprep.subr.bf16.mxu1 %v3709_v63  ;;  %v3680_v63 = vld [vmem:[#allocation9 + $0x28] ss:$16 sps:$4 sm:$0xff]  }
 0x127   :  { %2381 = vmatpush2.bf16.msra.mxu0 %v3626_v47 }
 0x128   :  { %2382 = vmatprep.subr.bf16.mxu0 %v3631_v49  ;;  %2422 = vmatpush2.bf16.msra.mxu1 %v3707_v1  ;;  %v3644_v49 = vld [vmem:[#allocation9 + $0xe8] ss:$16 sps:$4 sm:$0xff]  }
 0x129   :  { %2423 = vmatprep.subr.bf16.mxu1 %v3715_v3  ;;  %v3686_v1 = vld [vmem:[#allocation9 + $0x8] ss:$16 sps:$4 sm:$0xff]  }
 0x12a   :  { %v3692_v3 = vld [vmem:[#allocation9 + $0x1e8] ss:$16 sps:$4 sm:$0xff]  }
 0x12b   :  { %2383 = vmatpush2.bf16.msra.mxu0 %v3629_v51  ;;  %v3652_v51 = vld [vmem:[#allocation9 + $0xcc] ss:$16 sps:$4 sm:$0xff]  }
 0x12c   :  { %2384 = vmatprep.subr.bf16.mxu0 %v3634_v54  ;;  %2424 = vmatpush2.bf16.msra.mxu1 %v3713_v5  ;;  %v3658_v54 = vld [vmem:[#allocation9 + $0xac] ss:$16 sps:$4 sm:$0xff]   ;;  %v3698_v5 = vld [vmem:[#allocation9 + $0x1c8] ss:$16 sps:$4 sm:$0xff]  }
 0x12d   :  { %2425 = vmatprep.subr.bf16.mxu1 %v3721_v7  ;;  %v3704_v7 = vld [vmem:[#allocation9 + $0x1a8] ss:$16 sps:$4 sm:$0xff]  }
 0x12f   :  { %2385 = vmatpush2.bf16.msra.mxu0 %v3632_v56  ;;  %v3664_v56 = vld [vmem:[#allocation9 + $0x8c] ss:$16 sps:$4 sm:$0xff]  }
 0x130   :  { %2386 = vmatprep.subr.bf16.mxu0 %v3637_v58  ;;  %2426 = vmatpush2.bf16.msra.mxu1 %v3719_v10  ;;  %v3670_v58 = vld [vmem:[#allocation9 + $0x6c] ss:$16 sps:$4 sm:$0xff]  }
 0x131   :  { %2427 = vmatprep.subr.bf16.mxu1 %v3727_v13  ;;  %v3712_v10 = vld [vmem:[#allocation9 + $0x18c] ss:$16 sps:$4 sm:$0xff]   ;;  %v3716_v13 = vld [vmem:[#allocation9 + $0x168] ss:$16 sps:$4 sm:$0xff]  }
 0x133   :  { %2387 = vmatpush2.bf16.msra.mxu0 %v3635_v60  ;;  %v3676_v60 = vld [vmem:[#allocation9 + $0x4c] ss:$16 sps:$4 sm:$0xff]  }
 0x134   :  { %2388 = vmatprep.subr.bf16.mxu0 %v3640_v62  ;;  %2428 = vmatpush2.bf16.msra.mxu1 %v3725_v15  ;;  %v3682_v62 = vld [vmem:[#allocation9 + $0x2c] ss:$16 sps:$4 sm:$0xff]   ;;  %v3722_v15 = vld [vmem:[#allocation9 + $0x148] ss:$16 sps:$4 sm:$0xff]  }
 0x135   :  { %2429 = vmatprep.subr.bf16.mxu1 %v3733_v21 }
 0x137   :  { %2389 = vmatpush2.bf16.msra.mxu0 %v3638_v0  ;;  %v3688_v0 = vld [vmem:[#allocation9 + $0xc] ss:$16 sps:$4 sm:$0xff]  }
 0x138   :  { %2390 = vmatprep.subr.bf16.mxu0 %v3643_v2  ;;  %2430 = vmatpush2.bf16.msra.mxu1 %v3731_v22  ;;  %v3694_v2 = vld [vmem:[#allocation9 + $0x1ec] ss:$16 sps:$4 sm:$0xff]  }
 0x139   :  { %2431 = vmatprep.subr.bf16.mxu1 %v3739_v25 }
 0x13b   :  { %2391 = vmatpush2.bf16.msra.mxu0 %v3641_v4  ;;  %v3700_v4 = vld [vmem:[#allocation9 + $0x1cc] ss:$16 sps:$4 sm:$0xff]  }
 0x13c   :  { %2442 = vmatprep.subr.bf16.mxu0 %v3646_v6  ;;  %2432 = vmatpush2.bf16.msra.mxu1 %v3737_v26  ;;  %v3706_v6 = vld [vmem:[#allocation9 + $0x1ac] ss:$16 sps:$4 sm:$0xff]  }
 0x13d   :  { %2483 = vmatprep.subr.bf16.mxu1 %v3742_v27  ;;  %v3736_v27 = vld [vmem:[#allocation9 + $0x10c] ss:$16 sps:$4 sm:$0xff]  }
 0x13e   :  { %v1305_v11 = vpop.f32.mrf.mxu0 }
 0x13f   :  { %v1346_v12 = vpop.f32.mrf.mxu1 }
 0x140   :  { %v1347_v14 = vadd.f32 %v1346_v12, %v1305_v11  ;;  %v1307_v17 = vpop.f32.mrf.mxu0  ;;  %v3710_v11 = vld [vmem:[#allocation9 + $0x188] ss:$16 sps:$4 sm:$0xff]   ;;  %v3718_v12 = vld [vmem:[#allocation9 + $0x16c] ss:$16 sps:$4 sm:$0xff]  }
 0x141   :  { %v1348_v18 = vpop.f32.mrf.mxu1 }
 0x142   :  { %v1309_v19 = vpop.f32.mrf.mxu0  ;;  %v1349_v52 = vadd.f32 %v1348_v18, %v1307_v17  ;;  %v1544_v17 = vsub.s32 2, %v4042_v9  ;;  %v3730_v18 = vld [vmem:[#allocation9 + $0x12c] ss:$16 sps:$4 sm:$0xff]  }
 0x143   :  { %v1350_v20 = vpop.f32.mrf.mxu1  ;;  %v1548_v19 = vsub.s32 3, %v4042_v9 }
 0x144   :  { %v1310_v23 = vpop.f32.mrf.mxu0 }
 0x145   :  { %v1351_v24 = vpop.f32.mrf.mxu1  ;;  %v1545_v23 = vrot.slane %v4048_v8, %v1544_v17 }
 0x146   :  { %v3728_v24 = vld [vmem:[#allocation9 + $0x128] ss:$16 sps:$4 sm:$0xff]  }
 0x17e   :  { %v1387_v31 = vpop.f32.mrf.mxu0 }
 0x17f   :  { %v4054_v32 = vpop.f32.mrf.mxu1  ;;  %v1388_v33 = vadd.f32 %v1387_v31, %v1347_v14  ;;  %v3724_v14 = vld [vmem:[#allocation9 + $0x14c] ss:$16 sps:$4 sm:$0xff]   ;;  %v1549_v31 = vrot.slane %v4048_v8, %v1548_v19 }
 0x180   :  { %v1389_v35 = vpop.f32.mrf.mxu0  ;;  %v3745_v8 = vld [vmem:[#allocation9 + $0x2cc] ss:$16 sps:$4 sm:$0xff]  }
 0x181   :  { %v4059_v36 = vpop.f32.mrf.mxu1  ;;  %v1554_v37 = vadd.f32 %v1537_v30, %v1388_v33  ;;  %v1390_v39 = vadd.f32 %v1389_v35, %v1349_v52 }
 0x182   :  { %v1391_v40 = vpop.f32.mrf.mxu0 }
 0x183   :  { %v1432_v41 = vpop.f32.mrf.mxu1  ;;  %v1555_v43 = vadd.f32 %v1541_v34, %v1390_v39  ;;  %v1562_v44 = vmul.f32 %v1558_v38, %v1554_v37  ;;  %v1560_v34 = vld [vmem:[#allocation6 + $0x10] sm:$0xff]  ;;  %v3734_v37 = vld [vmem:[#allocation9 + $0x108] ss:$16 sps:$4 sm:$0xff]  }
 0x184   :  { %v1392_v45 = vpop.f32.mrf.mxu0  ;;  %v1561_v40 = vld [vmem:[#allocation6 + $0x18] sm:$0xff] }
 0x185   :  { %v1433_v46 = vpop.f32.mrf.mxu1  ;;  %v1563_v47 = vmul.f32 %v1559_v42, %v1555_v43  ;;  %v4061_v50 = vpack.c.bf16 %v1562_v44, %v1562_v44  ;;  %v3740_v44 = vld [vmem:[#allocation9 + $0x2e8] ss:$16 sps:$4 sm:$0xff]  }
 0x186   :  { %v3743_v46 = vld [vmem:[#allocation9 + $0x2c8] ss:$16 sps:$4 sm:$0xff]  }
 0x187   :  { %v1567_v48 = vpack.c.bf16 %v1563_v47, %v1563_v47  ;;  %v3748_v47 = vld [vmem:[#allocation9 + $0x2ac] ss:$16 sps:$4 sm:$0xff]  }
 0x189   :  { %2392 = vmatprep.mubr.bf16.mxu0 %v1567_v48 }
 0x18a   :  { %2393 = vmatmul.mubr.bf16.vlgmr.msra.gmra.mxu0 %v4061_v50 }
 0x18b   :  { %2443 = vmatpush1.bf16.msra.mxu0 %v3644_v49  ;;  %2474 = vmatprep.mubr.bf16.mxu0 %v1567_v48  ;;  %v3788_v48 = vld [vmem:[#allocation11 + $0x78] sm:$0xff]  }
 0x18c   :  { %2444 = vmatprep.subr.bf16.mxu0 %v3652_v51  ;;  %v3789_v49 = vld [vmem:[#allocation11 + $0x38] sm:$0xff]   ;;  %v3790_v51 = vld [vmem:[#allocation11 + $0x70] sm:$0xff]  }
 0x18f   :  { %2445 = vmatpush1.bf16.msra.mxu0 %v3650_v53  ;;  %v3746_v53 = vld [vmem:[#allocation9 + $0x2a8] ss:$16 sps:$4 sm:$0xff]  }
 0x190   :  { %2446 = vmatprep.subr.bf16.mxu0 %v3658_v54  ;;  %v3751_v54 = vld [vmem:[#allocation9 + $0x28c] ss:$16 sps:$4 sm:$0xff]  }
 0x193   :  { %2447 = vmatpush1.bf16.msra.mxu0 %v3656_v55  ;;  %v3791_v55 = vld [vmem:[#allocation11 + $0x30] sm:$0xff]  }
 0x194   :  { %2448 = vmatprep.subr.bf16.mxu0 %v3664_v56  ;;  %v3749_v56 = vld [vmem:[#allocation9 + $0x288] ss:$16 sps:$4 sm:$0xff]  }
 0x197   :  { %2449 = vmatpush1.bf16.msra.mxu0 %v3662_v57  ;;  %v3754_v57 = vld [vmem:[#allocation9 + $0x26c] ss:$16 sps:$4 sm:$0xff]  }
 0x198   :  { %2450 = vmatprep.subr.bf16.mxu0 %v3670_v58  ;;  %v3793_v58 = vld [vmem:[#allocation11 + $0x28] sm:$0xff]  }
 0x19b   :  { %2451 = vmatpush1.bf16.msra.mxu0 %v3668_v59  ;;  %v3794_v59 = vld [vmem:[#allocation11 + $0x60] sm:$0xff]  }
 0x19c   :  { %2452 = vmatprep.subr.bf16.mxu0 %v3676_v60  ;;  %v3752_v60 = vld [vmem:[#allocation9 + $0x268] ss:$16 sps:$4 sm:$0xff]  }
 0x19f   :  { %2453 = vmatpush1.bf16.msra.mxu0 %v3674_v61  ;;  %v3757_v61 = vld [vmem:[#allocation9 + $0x24c] ss:$16 sps:$4 sm:$0xff]  }
 0x1a0   :  { %2454 = vmatprep.subr.bf16.mxu0 %v3682_v62  ;;  %v3795_v62 = vld [vmem:[#allocation11 + $0x20] sm:$0xff]  }
 0x1a3   :  { %2455 = vmatpush1.bf16.msra.mxu0 %v3680_v63  ;;  %v3796_v63 = vld [vmem:[#allocation11 + $0x58] sm:$0xff]  }
 0x1a4   :  { %2456 = vmatprep.subr.bf16.mxu0 %v3688_v0  ;;  %v3755_v0 = vld [vmem:[#allocation9 + $0x248] ss:$16 sps:$4 sm:$0xff]  }
 0x1a7   :  { %2457 = vmatpush1.bf16.msra.mxu0 %v3686_v1  ;;  %v3760_v1 = vld [vmem:[#allocation9 + $0x22c] ss:$16 sps:$4 sm:$0xff]  }
 0x1a8   :  { %2458 = vmatprep.subr.bf16.mxu0 %v3694_v2  ;;  %v3797_v2 = vld [vmem:[#allocation11 + $0x18] sm:$0xff]  }
 0x1ab   :  { %2459 = vmatpush2.bf16.msra.mxu0 %v3692_v3  ;;  %v3758_v3 = vld [vmem:[#allocation9 + $0x228] ss:$16 sps:$4 sm:$0xff]  }
 0x1ac   :  { %2460 = vmatprep.subr.bf16.mxu0 %v3700_v4  ;;  %v3763_v4 = vld [vmem:[#allocation9 + $0x20c] ss:$16 sps:$4 sm:$0xff]  }
 0x1af   :  { %2461 = vmatpush2.bf16.msra.mxu0 %v3698_v5  ;;  %v3761_v5 = vld [vmem:[#allocation9 + $0x208] ss:$16 sps:$4 sm:$0xff]  }
 0x1b0   :  { %2462 = vmatprep.subr.bf16.mxu0 %v3706_v6  ;;  %v3766_v6 = vld [vmem:[#allocation9 + $0x3ec] ss:$16 sps:$4 sm:$0xff]  }
 0x1b3   :  { %2463 = vmatpush2.bf16.msra.mxu0 %v3704_v7  ;;  %v3764_v7 = vld [vmem:[#allocation9 + $0x3e8] ss:$16 sps:$4 sm:$0xff]  }
 0x1b4   :  { %2464 = vmatprep.subr.bf16.mxu0 %v3712_v10  ;;  %v3769_v10 = vld [vmem:[#allocation9 + $0x3cc] ss:$16 sps:$4 sm:$0xff]  }
 0x1b7   :  { %2465 = vmatpush2.bf16.msra.mxu0 %v3710_v11  ;;  %v3767_v11 = vld [vmem:[#allocation9 + $0x3c8] ss:$16 sps:$4 sm:$0xff]  }
 0x1b8   :  { %2466 = vmatprep.subr.bf16.mxu0 %v3718_v12  ;;  %v3772_v12 = vld [vmem:[#allocation9 + $0x3ac] ss:$16 sps:$4 sm:$0xff]  }
 0x1bb   :  { %2467 = vmatpush2.bf16.msra.mxu0 %v3716_v13  ;;  %v3770_v13 = vld [vmem:[#allocation9 + $0x3a8] ss:$16 sps:$4 sm:$0xff]  }
 0x1bc   :  { %2468 = vmatprep.subr.bf16.mxu0 %v3724_v14  ;;  %v3775_v14 = vld [vmem:[#allocation9 + $0x38c] ss:$16 sps:$4 sm:$0xff]  }
 0x1be   :  { %v1469_v20 = vpop.f32.mrf.mxu0 }
 0x1bf   :  { %v1510_v21 = vpop.f32.mrf.mxu1  ;;  %v1470_v22 = vadd.f32 %v1469_v20, %v4054_v32  ;;  %2469 = vmatpush2.bf16.msra.mxu0 %v3722_v15  ;;  %v3773_v15 = vld [vmem:[#allocation9 + $0x388] ss:$16 sps:$4 sm:$0xff]  }
 0x1c0   :  { %v1471_v25 = vpop.f32.mrf.mxu0  ;;  %2470 = vmatprep.subr.bf16.mxu0 %v3730_v18  ;;  %v3778_v18 = vld [vmem:[#allocation9 + $0x36c] ss:$16 sps:$4 sm:$0xff]   ;;  %v3776_v20 = vld [vmem:[#allocation9 + $0x368] ss:$16 sps:$4 sm:$0xff]  }
 0x1c1   :  { %v1512_v26 = vpop.f32.mrf.mxu1  ;;  %v1511_v28 = vadd.f32 %v1510_v21, %v1470_v22  ;;  %v1472_v30 = vadd.f32 %v1471_v25, %v4059_v36  ;;  %v3781_v21 = vld [vmem:[#allocation9 + $0x34c] ss:$16 sps:$4 sm:$0xff]   ;;  %v3779_v22 = vld [vmem:[#allocation9 + $0x348] ss:$16 sps:$4 sm:$0xff]  }
 0x1c2   :  { %v1473_v52 = vpop.f32.mrf.mxu0  ;;  %v3787_v25 = vld [vmem:[#allocation9 + $0x30c] ss:$16 sps:$4 sm:$0xff]  }
 0x1c3   :  { %v1514_v33 = vpop.f32.mrf.mxu1  ;;  %v1556_v32 = vadd.f32 %v1545_v23, %v1511_v28  ;;  %v1513_v35 = vadd.f32 %v1512_v26, %v1472_v30  ;;  %2471 = vmatpush2.bf16.msra.mxu0 %v3728_v24  ;;  %v3784_v23 = vld [vmem:[#allocation9 + $0x32c] ss:$16 sps:$4 sm:$0xff]   ;;  %v3782_v24 = vld [vmem:[#allocation9 + $0x328] ss:$16 sps:$4 sm:$0xff]   ;;  %v3799_v28 = vld [vmem:[#allocation11 + $0x10] sm:$0xff]  }
 0x1c4   :  { %v1474_v38 = vpop.f32.mrf.mxu0  ;;  %2472 = vmatprep.subr.bf16.mxu0 %v3736_v27  ;;  %v3785_v26 = vld [vmem:[#allocation9 + $0x308] ss:$16 sps:$4 sm:$0xff]   ;;  %v3798_v27 = vld [vmem:[#allocation11 + $0x50] sm:$0xff]   ;;  %v3802_v52 = vld [vmem:[#allocation11 + $0x40] sm:$0xff]  }
 0x1c5   :  { %v1515_v39 = vpop.f32.mrf.mxu1  ;;  %v1557_v41 = vadd.f32 %v1549_v31, %v1513_v35  ;;  %v1564_v42 = vmul.f32 %v1560_v34, %v1556_v32  ;;  %v3800_v30 = vld [vmem:[#allocation11 + $0x48] sm:$0xff]   ;;  %v3803_v33 = vld [vmem:[#allocation11] sm:$0xff]   ;;  %v3804_v32 = vld [vmem:[#allocation11 + $0xf8] sm:$0xff]  }
 0x1c6   :  { %v3801_v31 = vld [vmem:[#allocation11 + $0x8] sm:$0xff]   ;;  %v3805_v34 = vld [vmem:[#allocation11 + $0xb8] sm:$0xff]   ;;  %v3806_v35 = vld [vmem:[#allocation11 + $0xf0] sm:$0xff]  }
 0x1c7   :  { %2473 = vmatpush2.bf16.msra.mxu0 %v3734_v37  ;;  %v1565_v43 = vmul.f32 %v1561_v40, %v1557_v41  ;;  %v4074_v45 = vpack.c.bf16 %v1564_v42, %v1564_v42  ;;  %v3807_v37 = vld [vmem:[#allocation11 + $0xb0] sm:$0xff]   ;;  %v3808_v38 = vld [vmem:[#allocation11 + $0xe8] sm:$0xff]   ;;  %v3810_v40 = vld [vmem:[#allocation11 + $0xe0] sm:$0xff]  }
 0x1c8   :  { %3254 = vmatprep.subr.bf16.mxu0 %v3788_v48  ;;  %v3809_v39 = vld [vmem:[#allocation11 + $0xa8] sm:$0xff]   ;;  %v3811_v41 = vld [vmem:[#allocation11 + $0xa0] sm:$0xff]   ;;  %v3812_v42 = vld [vmem:[#allocation11 + $0xd8] sm:$0xff]  }
 0x1c9   :  { %v1569_v36 = vpack.c.bf16 %v1565_v43, %v1565_v43  ;;  %v3813_v43 = vld [vmem:[#allocation11 + $0x98] sm:$0xff]   ;;  %v3817_v48 = vld [vmem:[#allocation11 + $0x88] sm:$0xff]  }
 0x1ca   :  { %2475 = vmatmul.mubr.bf16.vlgmr.msra.gmra.mxu0 %v4061_v50  ;;  %v3792_v50 = vld [vmem:[#allocation11 + $0x68] sm:$0xff]  }
 0x1cb   :  { %2433 = vmatprep.mubr.bf16.mxu1 %v1569_v36  ;;  %3255 = vmatpush3.bf16.msra.mxu0 %v3789_v49 }
 0x1cc   :  { %2434 = vmatmul.mubr.bf16.vlgmr.msra.gmra.mxu1 %v4074_v45  ;;  %3256 = vmatprep.subr.bf16.mxu0 %v3790_v51  ;;  %v3818_v51 = vld [vmem:[#allocation11 + $0xc0] sm:$0xff]  }
 0x1cd   :  { %2484 = vmatpush1.bf16.msra.mxu1 %v3740_v44  ;;  %2515 = vmatprep.mubr.bf16.mxu1 %v1569_v36  ;;  %v3814_v36 = vld [vmem:[#allocation11 + $0xd0] sm:$0xff]  }
 0x1ce   :  { %2485 = vmatprep.subr.bf16.mxu1 %v3745_v8 }
 0x1cf   :  { %3257 = vmatpush3.bf16.msra.mxu0 %v3791_v55 }
 0x1d0   :  { %3258 = vmatprep.subr.bf16.mxu0 %v3792_v50 }
 0x1d1   :  { %2486 = vmatpush1.bf16.msra.mxu1 %v3743_v46  ;;  %v3816_v46 = vld [vmem:[#allocation11 + $0xc8] sm:$0xff]  }
 0x1d2   :  { %2487 = vmatprep.subr.bf16.mxu1 %v3748_v47 }
 0x1d3   :  { %3259 = vmatpush3.bf16.msra.mxu0 %v3793_v58 }
 0x1d4   :  { %3260 = vmatprep.subr.bf16.mxu0 %v3794_v59 }
 0x1d5   :  { %2488 = vmatpush1.bf16.msra.mxu1 %v3746_v53  ;;  %v3819_v53 = vld [vmem:[#allocation11 + $0x80] sm:$0xff]  }
 0x1d6   :  { %2489 = vmatprep.subr.bf16.mxu1 %v3751_v54  ;;  %v1698_v54 = vld [vmem:[%s4101_s5] sm:$0xf] }
 0x1d7   :  { %3261 = vmatpush3.bf16.msra.mxu0 %v3795_v62  ;;  %v1703_v55 = vrot.slane %v1698_v54, %v1536_v16  ;;  %v1707_v50 = vrot.slane %v1698_v54, %v1540_v29 }
 0x1d8   :  { %3262 = vmatprep.subr.bf16.mxu0 %v3796_v63 }
 0x1d9   :  { %2490 = vmatpush1.bf16.msra.mxu1 %v3749_v56 }
 0x1da   :  { %2491 = vmatprep.subr.bf16.mxu1 %v3754_v57 }
 0x1db   :  { %3263 = vmatpush3.bf16.msra.mxu0 %v3797_v2 }
 0x1dc   :  { %3264 = vmatprep.subr.bf16.mxu0 %v3798_v27 }
 0x1dd   :  { %2492 = vmatpush1.bf16.msra.mxu1 %v3752_v60 }
 0x1de   :  { %2493 = vmatprep.subr.bf16.mxu1 %v3757_v61 }
 0x1df   :  { %3265 = vmatpush3.bf16.msra.mxu0 %v3799_v28 }
 0x1e0   :  { %3266 = vmatprep.subr.bf16.mxu0 %v3800_v30 }
 0x1e1   :  { %2494 = vmatpush1.bf16.msra.mxu1 %v3755_v0 }
 0x1e2   :  { %2495 = vmatprep.subr.bf16.mxu1 %v3760_v1 }
 0x1e3   :  { %3267 = vmatpush3.bf16.msra.mxu0 %v3801_v31 }
 0x1e4   :  { %3268 = vmatprep.subr.bf16.mxu0 %v3802_v52  ;;  %v3221_v52 = vld [vmem:[%s4103_s7] ss:$0 sm:$0xff] }
 0x1e5   :  { %2496 = vmatpush1.bf16.msra.mxu1 %v3758_v3 }
 0x1e6   :  { %2497 = vmatprep.subr.bf16.mxu1 %v3763_v4 }
 0x1e7   :  { %3269 = vmatpush3.bf16.msra.mxu0 %v3803_v33 }
 0x1e9   :  { %2498 = vmatpush1.bf16.msra.mxu1 %v3761_v5 }
 0x1ea   :  { %2499 = vmatprep.subr.bf16.mxu1 %v3766_v6 }
 0x1ed   :  { %2500 = vmatpush2.bf16.msra.mxu1 %v3764_v7 }
 0x1ee   :  { %2501 = vmatprep.subr.bf16.mxu1 %v3769_v10  ;;  %v1711_v10 = vrot.slane %v1698_v54, %v1544_v17 }
 0x1f1   :  { %2502 = vmatpush2.bf16.msra.mxu1 %v3767_v11  ;;  %v1715_v11 = vrot.slane %v1698_v54, %v1548_v19 }
 0x1f2   :  { %2503 = vmatprep.subr.bf16.mxu1 %v3772_v12 }
 0x1f5   :  { %2504 = vmatpush2.bf16.msra.mxu1 %v3770_v13 }
 0x1f6   :  { %2505 = vmatprep.subr.bf16.mxu1 %v3775_v14 }
 0x1f9   :  { %2506 = vmatpush2.bf16.msra.mxu1 %v3773_v15 }
 0x1fa   :  { %2507 = vmatprep.subr.bf16.mxu1 %v3778_v18 }
 0x1fd   :  { %2508 = vmatpush2.bf16.msra.mxu1 %v3776_v20 }
 0x1fe   :  { %2509 = vmatprep.subr.bf16.mxu1 %v3781_v21 }
 0x201   :  { %2510 = vmatpush2.bf16.msra.mxu1 %v3779_v22 }
 0x202   :  { %2511 = vmatprep.subr.bf16.mxu1 %v3784_v23 }
 0x205   :  { %2512 = vmatpush2.bf16.msra.mxu1 %v3782_v24 }
 0x206   :  { %2513 = vmatprep.subr.bf16.mxu1 %v3787_v25 }
 0x209   :  { %2514 = vmatpush2.bf16.msra.mxu1 %v3785_v26 }
 0x20a   :  { %3276 = vmatprep.subr.bf16.mxu1 %v3804_v32 }
 0x20c   :  { %2516 = vmatmul.mubr.bf16.vlgmr.msra.gmra.mxu1 %v4074_v45  ;;  %v3815_v45 = vld [vmem:[#allocation11 + $0x90] sm:$0xff]  }
 0x20d   :  { %3277 = vmatpush3.bf16.msra.mxu1 %v3805_v34 }
 0x20e   :  { %3278 = vmatprep.subr.bf16.mxu1 %v3806_v35 }
 0x211   :  { %3279 = vmatpush3.bf16.msra.mxu1 %v3807_v37 }
 0x212   :  { %3280 = vmatprep.subr.bf16.mxu1 %v3808_v38 }
 0x215   :  { %3281 = vmatpush3.bf16.msra.mxu1 %v3809_v39 }
 0x216   :  { %3282 = vmatprep.subr.bf16.mxu1 %v3810_v40 }
 0x219   :  { %3283 = vmatpush3.bf16.msra.mxu1 %v3811_v41 }
 0x21a   :  { %3284 = vmatprep.subr.bf16.mxu1 %v3812_v42 }
 0x21d   :  { %3285 = vmatpush3.bf16.msra.mxu1 %v3813_v43 }
 0x21e   :  { %3286 = vmatprep.subr.bf16.mxu1 %v3814_v36 }
 0x221   :  { %3287 = vmatpush3.bf16.msra.mxu1 %v3815_v45 }
 0x222   :  { %3288 = vmatprep.subr.bf16.mxu1 %v3816_v46 }
 0x225   :  { %3289 = vmatpush3.bf16.msra.mxu1 %v3817_v48 }
 0x226   :  { %3290 = vmatprep.subr.bf16.mxu1 %v3818_v51 }
 0x229   :  { %3291 = vmatpush3.bf16.msra.mxu1 %v3819_v53 }
 0x24a   :  { %v2394_v44 = vpop.f32.mrf.mxu0 }
 0x24b   :  { %v2395_v57 = vadd.f32 %v2394_v44, %v1703_v55 }
 0x24c   :  { %v2396_v8 = vpop.f32.mrf.mxu0 }
 0x24d   :  { %v2397_v60 = vadd.f32 %v2396_v8, %v1707_v50 }
 0x24e   :  { %v2398_v47 = vpop.f32.mrf.mxu0 }
 0x250   :  { %v2399_v49 = vpop.f32.mrf.mxu0 }
 0x28a   :  { %v2476_v56 = vpop.f32.mrf.mxu0 }
 0x28b   :  { %v2477_v12 = vadd.f32 %v2476_v56, %v1711_v10 }
 0x28c   :  { %v2478_v58 = vpop.f32.mrf.mxu0  ;;  %v2435_v59 = vpop.f32.mrf.mxu1 }
 0x28d   :  { %v2436_v61 = vadd.f32 %v2435_v59, %v2395_v57  ;;  %v2479_v14 = vadd.f32 %v2478_v58, %v1715_v11 }
 0x28e   :  { %v2480_v62 = vpop.f32.mrf.mxu0  ;;  %v2437_v63 = vpop.f32.mrf.mxu1 }
 0x28f   :  { %vm2524_vm0 = vcmp.ge.f32.partialorder %v2436_v61, 0.0  ;;  %v2528_v0 = vmul.f32 0.01, %v2436_v61  ;;  %v2438_v1 = vadd.f32 %v2437_v63, %v2397_v60 }
 0x290   :  { %v2481_v2 = vpop.f32.mrf.mxu0  ;;  %v2439_v3 = vpop.f32.mrf.mxu1 }
 0x291   :  { %vm2525_vm1 = vcmp.ge.f32.partialorder %v2438_v1, 0.0  ;;  %v2529_v4 = vmul.f32 0.01, %v2438_v1  ;;  %v2532_v5 = vsel %vm2524_vm0, %v2436_v61, %v2528_v0 }
 0x292   :  { %v2440_v16 = vpop.f32.mrf.mxu1  ;;  %v2536_v29 = vpack.c.bf16 %v2532_v5, %v2532_v5 }
 0x293   :  { %v2533_v6 = vsel %vm2525_vm1, %v2438_v1, %v2529_v4 }
 0x294   :  { %v2537_v7 = vpack.c.bf16 %v2533_v6, %v2533_v6 }
 0x296   :  { %2835 = vmatprep.mubr.bf16.mxu0 %v2537_v7 }
 0x297   :  { %2836 = vmatmul.mubr.bf16.vlgmr.msra.gmra.mxu0 %v2536_v29 }
 0x2cc   :  { %v2517_v13 = vpop.f32.mrf.mxu1 }
 0x2cd   :  { %v2518_v15 = vadd.f32 %v2517_v13, %v2477_v12 }
 0x2ce   :  { %v2519_v18 = vpop.f32.mrf.mxu1 }
 0x2cf   :  { %vm2526_vm2 = vcmp.ge.f32.partialorder %v2518_v15, 0.0  ;;  %v2530_v20 = vmul.f32 0.01, %v2518_v15  ;;  %v2520_v21 = vadd.f32 %v2519_v18, %v2479_v14 }
 0x2d0   :  { %v2521_v22 = vpop.f32.mrf.mxu1 }
 0x2d1   :  { %vm2527_vm3 = vcmp.ge.f32.partialorder %v2520_v21, 0.0  ;;  %v2531_v23 = vmul.f32 0.01, %v2520_v21  ;;  %v2534_v24 = vsel %vm2526_vm2, %v2518_v15, %v2530_v20 }
 0x2d2   :  { %v2522_v25 = vpop.f32.mrf.mxu1  ;;  %v2538_v28 = vpack.c.bf16 %v2534_v24, %v2534_v24 }
 0x2d3   :  { %v2535_v26 = vsel %vm2527_vm3, %v2520_v21, %v2531_v23 }
 0x2d4   :  { %v2539_v27 = vpack.c.bf16 %v2535_v26, %v2535_v26 }
 0x2d6   :  { %2875 = vmatprep.mubr.bf16.mxu1 %v2539_v27 }
 0x2d7   :  { %2876 = vmatmul.mubr.bf16.vlgmr.msra.gmra.mxu1 %v2538_v28 }
 0x357   :  { %v3270_v9 = vpop.f32.mrf.mxu0 }
 0x359   :  { %v3271_v17 = vpop.f32.mrf.mxu0 }
 0x35a   :  { %v3272_v31 = vadd.f32 %v3271_v17, %v3270_v9 }
 0x35b   :  { %v3273_v19 = vpop.f32.mrf.mxu0 }
 0x35c   :  { %v2838_v34 = vadd.f32 %v3272_v31, %v3221_v52 }
 0x35d   :  { %v3274_v30 = vpop.f32.mrf.mxu0 }
 0x397   :  { %v3292_v33 = vpop.f32.mrf.mxu1 }
 0x399   :  { %v3293_v32 = vpop.f32.mrf.mxu1 }
 0x39a   :  { %v3294_v35 = vadd.f32 %v3293_v32, %v3292_v33 }
 0x39b   :  { %v3295_v37 = vpop.f32.mrf.mxu1 }
 0x39c   :  { %v2878_v38 = vadd.f32 %v3294_v35, %v2838_v34 }
 0x39d   :  { %v3296_v39 = vpop.f32.mrf.mxu1 }
 0x39e   :  { %2883 = vst [vmem:[#allocation12] sm:$0xff] %v2878_v38 }
 0x39f   :  { %3931 = shalt.err (!%p3928_p1)
}
 0x3a0   :  { %2893 = dma.vmem_to_hbm [thread:$0]  %s2891_s12, 128, %s4104_s8, [#allocation5]  }
 0x3a1   :  { %3946 = dma.done.wait [#allocation5], 128  }
 0x3a2   :  { %3947 = vsyncadd [#allocation5], 4294967168 }
 0x3a3   :  { %2897 = vsyncpa [#allocation4], 1 }
 0x3a4   :  { %2898 = vsyncpa [#allocation7], 1 }
 0x3a5   :  { %2899 = vsyncpa [#allocation10], 1 }
 0x3a6   :  { %2900 = vsyncpa [#allocation5], 1 }

</bundles_post_ra>
